<compile_context>
chip_gen: v7x
topology: tpu7x:2x2x1
jax: 0.10.0
libtpu: 0.0.40
codegen_flags: <defaults>
</compile_context>

<pallas_src>
import functools

import jax
import jax.numpy as jnp
from jax.experimental import pallas as pl
from jax.experimental.pallas import tpu as pltpu

LANE = 128


def _round_up(x, m):
    return (x + m - 1) // m * m


def bignet_kernel(x_ref,
                  w1_ref, b1_ref, w2_ref, b2_ref, w3_ref, b3_ref,
                  w4_ref, b4_ref, w5_ref, b5_ref, w6_ref, b6_ref,
                  o_ref):
    """One (block_m, D_in) batch tile -> (block_m, D_out_padded) output tile.

    All six layers fused in VMEM.  MXU operands are bf16, accumulation is f32,
    bias-add + ReLU run on the f32 accumulator, then downcast to bf16 for the
    next layer's matmul input.  Final store is bf16 (lane-dense, unmasked).
    """
    def layer(h_bf16, w_ref, b_ref, *, relu):
        acc = jnp.dot(h_bf16, w_ref[...], preferred_element_type=jnp.float32)
        acc = acc + b_ref[...]            # (1, N) f32 bias broadcast over rows
        if relu:
            return jnp.maximum(acc, 0.0).astype(jnp.bfloat16)
        return acc

    h = x_ref[...]                        # bf16 (block_m, D_in)
    h = layer(h, w1_ref, b1_ref, relu=True)
    h = layer(h, w2_ref, b2_ref, relu=True)
    h = layer(h, w3_ref, b3_ref, relu=True)
    h = layer(h, w4_ref, b4_ref, relu=True)
    h = layer(h, w5_ref, b5_ref, relu=True)
    o_ref[...] = layer(h, w6_ref, b6_ref, relu=False).astype(o_ref.dtype)


def prepare_params(params):
    """One-time prep (call OUTSIDE jit): bf16 weights, f32 (1, N) biases, and
    the final layer's N padded up to a multiple of 128 lanes so the kernel's
    output store is an unmasked 128-wide vst."""
    d_out = params[-1][0].shape[1]
    d_out_pad = _round_up(d_out, LANE)
    prepared = []
    for li, (w, b) in enumerate(params):
        w = jnp.asarray(w, jnp.bfloat16)
        b = jnp.asarray(b, jnp.float32).reshape(1, -1)
        if li == len(params) - 1:
            w = jnp.pad(w, ((0, 0), (0, d_out_pad - d_out)))
            b = jnp.pad(b, ((0, 0), (0, d_out_pad - d_out)))
        prepared.append((w, b))
    return prepared, d_out


def bignet_forward(x, prepared_params, *, d_out):
    """x: (B, D_in) f32.  prepared_params: output of prepare_params()."""
    B, D_in = x.shape
    d_out_pad = prepared_params[-1][0].shape[1]

    # Tile selection (perf review):
    #   * big enough to amortize the ~0.35us per-grid-step pipeline overhead,
    #   * capped so small batches don't over-pad,
    #   * >= 2 grid steps whenever B allows, so dimension_semantics=("parallel",)
    #     can shard the batch axis across v7x's two TensorCores.
    block_m = min(2048, max(256, _round_up(pl.cdiv(B, 2), 256)))
    B_pad = _round_up(max(B, 1), block_m)
    x_p = jnp.pad(x, ((0, B_pad - B), (0, 0))).astype(jnp.bfloat16)

    flat_inputs = [x_p]
    in_specs = [pl.BlockSpec((block_m, D_in), lambda i: (i, 0))]
    for w, b in prepared_params:
        flat_inputs += [w, b]
        # Resident weights/biases: constant block index across the batch grid.
        in_specs += [pl.BlockSpec(w.shape, lambda i: (0, 0)),
                     pl.BlockSpec(b.shape, lambda i: (0, 0))]

    # Cost / VMEM bookkeeping (all Python ints).
    dims = [(w.shape[0], w.shape[1]) for w, _ in prepared_params]
    max_width = max(fo for _, fo in dims)
    flops = 2 * B_pad * sum(fi * fo for fi, fo in dims)
    param_bytes = sum(fi * fo * 2 + fo * 4 for fi, fo in dims)   # bf16 W + f32 b
    bytes_accessed = (B_pad * D_in * 2          # bf16 input
                      + param_bytes             # weights DMA'd once
                      + B_pad * d_out_pad * 2)  # bf16 output
    vmem_limit = int(2 * param_bytes                 # resident W/b (2 buffers each)
                     + 2 * block_m * D_in * 2        # double-buffered x tiles (bf16)
                     + 2 * block_m * d_out_pad * 2   # double-buffered out tiles (bf16)
                     + 8 * block_m * max_width * 4   # in-kernel f32/bf16 intermediates
                     + (4 << 20))                    # headroom

    out_padded = pl.pallas_call(
        bignet_kernel,
        out_shape=jax.ShapeDtypeStruct((B_pad, d_out_pad), jnp.bfloat16),
        grid=(B_pad // block_m,),
        in_specs=in_specs,
        out_specs=pl.BlockSpec((block_m, d_out_pad), lambda i: (i, 0)),
        compiler_params=pltpu.CompilerParams(
            dimension_semantics=("parallel",),       # megacore on v7x
            vmem_limit_bytes=vmem_limit),
        cost_estimate=pl.CostEstimate(flops=flops, transcendentals=0,
                                      bytes_accessed=bytes_accessed),
    )(*flat_inputs)

    return out_padded[:B, :d_out].astype(jnp.float32)


def init_params(key, D_in, D_out):
    """Deterministic init matching the PyTorch module's layer shapes.
    PyTorch Linear weight is (out, in); we store the transpose (in, out)."""
    dims = [(D_in, 256), (256, 256), (256, 256), (256, 256), (256, 128), (128, D_out)]
    params = []
    for i, (fan_in, fan_out) in enumerate(dims):
        kw, kb, key = jax.random.split(jax.random.fold_in(key, i), 3)
        bound = 1.0 / jnp.sqrt(fan_in)
        w = jax.random.uniform(kw, (fan_in, fan_out), jnp.float32, -bound, bound)
        b = jax.random.uniform(kb, (1, fan_out), jnp.float32, -bound, bound)
        params.append((w, b))
    return params


def reference_forward(x, params):
    """Pure-JAX f32 reference of the same forward pass."""
    h = x
    for i, (w, b) in enumerate(params):
        h = h @ w + b
        if i < len(params) - 1:
            h = jnp.maximum(h, 0.0)
    return h


if __name__ == "__main__":
    B, D_in, D_out = 8, 32, 16
    key = jax.random.PRNGKey(0)
    kx, kp = jax.random.split(key)
    x = jax.random.normal(kx, (B, D_in), jnp.float32)
    params = init_params(kp, D_in, D_out)

    # One-time parameter prep (bf16 cast / bias reshape / final-layer pad)
    # hoisted OUT of the jitted forward.
    prepared, d_out = prepare_params(params)

    fwd = jax.jit(functools.partial(bignet_forward, d_out=d_out))
    out = jax.block_until_ready(fwd(x, prepared))

    ref = reference_forward(x, params)
    assert out.shape == (B, D_out)
    # bf16 MXU inputs, bf16 inter-layer activations and a bf16 final store vs
    # the f32 reference -> loosened tolerance (accumulation stays f32).
    assert jnp.allclose(out, ref, atol=5e-2, rtol=5e-2), \
        float(jnp.max(jnp.abs(out - ref)))
    print("KERNEL_OK")
</pallas_src>

<mosaic_0001>
module attributes {stable_mosaic.version = 11 : i64} {
  func.func @bignet_kernel(%arg0: i32, %arg1: memref<256x32xbf16, #tpu.memory_space<vmem>>, %arg2: memref<32x256xbf16, #tpu.memory_space<vmem>>, %arg3: memref<1x256xf32, #tpu.memory_space<vmem>>, %arg4: memref<256x256xbf16, #tpu.memory_space<vmem>>, %arg5: memref<1x256xf32, #tpu.memory_space<vmem>>, %arg6: memref<256x256xbf16, #tpu.memory_space<vmem>>, %arg7: memref<1x256xf32, #tpu.memory_space<vmem>>, %arg8: memref<256x256xbf16, #tpu.memory_space<vmem>>, %arg9: memref<1x256xf32, #tpu.memory_space<vmem>>, %arg10: memref<256x128xbf16, #tpu.memory_space<vmem>>, %arg11: memref<1x128xf32, #tpu.memory_space<vmem>>, %arg12: memref<128x128xbf16, #tpu.memory_space<vmem>>, %arg13: memref<1x128xf32, #tpu.memory_space<vmem>>, %arg14: memref<256x128xbf16, #tpu.memory_space<vmem>>) attributes {dimension_semantics = [#tpu.dimension_semantics<parallel>], iteration_bounds = array<i64: 1>, scalar_prefetch = 0 : i64, scratch_operands = 0 : i64, tpu.core_type = #tpu.core_type<tc>, window_params = [{transform_indices = @transform_0, window_bounds = array<i64: 256, 32>}, {pipeline_mode = #tpu.pipeline_mode<synchronous>, transform_indices = @transform_1, window_bounds = array<i64: 32, 256>}, {pipeline_mode = #tpu.pipeline_mode<synchronous>, transform_indices = @transform_2, window_bounds = array<i64: 1, 256>}, {pipeline_mode = #tpu.pipeline_mode<synchronous>, transform_indices = @transform_3, window_bounds = array<i64: 256, 256>}, {pipeline_mode = #tpu.pipeline_mode<synchronous>, transform_indices = @transform_4, window_bounds = array<i64: 1, 256>}, {pipeline_mode = #tpu.pipeline_mode<synchronous>, transform_indices = @transform_5, window_bounds = array<i64: 256, 256>}, {pipeline_mode = #tpu.pipeline_mode<synchronous>, transform_indices = @transform_6, window_bounds = array<i64: 1, 256>}, {pipeline_mode = #tpu.pipeline_mode<synchronous>, transform_indices = @transform_7, window_bounds = array<i64: 256, 256>}, {pipeline_mode = #tpu.pipeline_mode<synchronous>, transform_indices = @transform_8, window_bounds = array<i64: 1, 256>}, {pipeline_mode = #tpu.pipeline_mode<synchronous>, transform_indices = @transform_9, window_bounds = array<i64: 256, 128>}, {pipeline_mode = #tpu.pipeline_mode<synchronous>, transform_indices = @transform_10, window_bounds = array<i64: 1, 128>}, {pipeline_mode = #tpu.pipeline_mode<synchronous>, transform_indices = @transform_11, window_bounds = array<i64: 128, 128>}, {pipeline_mode = #tpu.pipeline_mode<synchronous>, transform_indices = @transform_12, window_bounds = array<i64: 1, 128>}, {transform_indices = @transform_13, window_bounds = array<i64: 256, 128>}]} {
    %c0 = arith.constant 0 : index
    %c0_0 = arith.constant 0 : index
    %0 = vector.load %arg1[%c0, %c0_0] : memref<256x32xbf16, #tpu.memory_space<vmem>>, vector<256x32xbf16>
    %c0_1 = arith.constant 0 : index
    %c0_2 = arith.constant 0 : index
    %1 = vector.load %arg2[%c0_1, %c0_2] : memref<32x256xbf16, #tpu.memory_space<vmem>>, vector<32x256xbf16>
    %cst = arith.constant dense<0.000000e+00> : vector<256x256xf32>
    %2 = tpu.matmul %0, %1, %cst {dimension_numbers = #tpu.dot_dimension_numbers<[1], [0], [0], [1], [0, 0, 1, 1], [], []>} : vector<256x32xbf16>, vector<32x256xbf16>, vector<256x256xf32> -> vector<256x256xf32>
    %c0_3 = arith.constant 0 : index
    %c0_4 = arith.constant 0 : index
    %3 = vector.load %arg3[%c0_3, %c0_4] : memref<1x256xf32, #tpu.memory_space<vmem>>, vector<1x256xf32>
    %4 = vector.broadcast %3 : vector<1x256xf32> to vector<256x256xf32>
    %5 = arith.addf %2, %4 : vector<256x256xf32>
    %cst_5 = arith.constant 0.000000e+00 : f32
    %6 = vector.broadcast %cst_5 : f32 to vector<256x256xf32>
    %7 = arith.maximumf %5, %6 : vector<256x256xf32>
    %8 = arith.truncf %7 : vector<256x256xf32> to vector<256x256xbf16>
    %c0_6 = arith.constant 0 : index
    %c0_7 = arith.constant 0 : index
    %9 = vector.load %arg4[%c0_6, %c0_7] : memref<256x256xbf16, #tpu.memory_space<vmem>>, vector<256x256xbf16>
    %cst_8 = arith.constant dense<0.000000e+00> : vector<256x256xf32>
    %10 = tpu.matmul %8, %9, %cst_8 {dimension_numbers = #tpu.dot_dimension_numbers<[1], [0], [0], [1], [0, 0, 1, 1], [], []>} : vector<256x256xbf16>, vector<256x256xbf16>, vector<256x256xf32> -> vector<256x256xf32>
    %c0_9 = arith.constant 0 : index
    %c0_10 = arith.constant 0 : index
    %11 = vector.load %arg5[%c0_9, %c0_10] : memref<1x256xf32, #tpu.memory_space<vmem>>, vector<1x256xf32>
    %12 = vector.broadcast %11 : vector<1x256xf32> to vector<256x256xf32>
    %13 = arith.addf %10, %12 : vector<256x256xf32>
    %cst_11 = arith.constant 0.000000e+00 : f32
    %14 = vector.broadcast %cst_11 : f32 to vector<256x256xf32>
    %15 = arith.maximumf %13, %14 : vector<256x256xf32>
    %16 = arith.truncf %15 : vector<256x256xf32> to vector<256x256xbf16>
    %c0_12 = arith.constant 0 : index
    %c0_13 = arith.constant 0 : index
    %17 = vector.load %arg6[%c0_12, %c0_13] : memref<256x256xbf16, #tpu.memory_space<vmem>>, vector<256x256xbf16>
    %cst_14 = arith.constant dense<0.000000e+00> : vector<256x256xf32>
    %18 = tpu.matmul %16, %17, %cst_14 {dimension_numbers = #tpu.dot_dimension_numbers<[1], [0], [0], [1], [0, 0, 1, 1], [], []>} : vector<256x256xbf16>, vector<256x256xbf16>, vector<256x256xf32> -> vector<256x256xf32>
    %c0_15 = arith.constant 0 : index
    %c0_16 = arith.constant 0 : index
    %19 = vector.load %arg7[%c0_15, %c0_16] : memref<1x256xf32, #tpu.memory_space<vmem>>, vector<1x256xf32>
    %20 = vector.broadcast %19 : vector<1x256xf32> to vector<256x256xf32>
    %21 = arith.addf %18, %20 : vector<256x256xf32>
    %cst_17 = arith.constant 0.000000e+00 : f32
    %22 = vector.broadcast %cst_17 : f32 to vector<256x256xf32>
    %23 = arith.maximumf %21, %22 : vector<256x256xf32>
    %24 = arith.truncf %23 : vector<256x256xf32> to vector<256x256xbf16>
    %c0_18 = arith.constant 0 : index
    %c0_19 = arith.constant 0 : index
    %25 = vector.load %arg8[%c0_18, %c0_19] : memref<256x256xbf16, #tpu.memory_space<vmem>>, vector<256x256xbf16>
    %cst_20 = arith.constant dense<0.000000e+00> : vector<256x256xf32>
    %26 = tpu.matmul %24, %25, %cst_20 {dimension_numbers = #tpu.dot_dimension_numbers<[1], [0], [0], [1], [0, 0, 1, 1], [], []>} : vector<256x256xbf16>, vector<256x256xbf16>, vector<256x256xf32> -> vector<256x256xf32>
    %c0_21 = arith.constant 0 : index
    %c0_22 = arith.constant 0 : index
    %27 = vector.load %arg9[%c0_21, %c0_22] : memref<1x256xf32, #tpu.memory_space<vmem>>, vector<1x256xf32>
    %28 = vector.broadcast %27 : vector<1x256xf32> to vector<256x256xf32>
    %29 = arith.addf %26, %28 : vector<256x256xf32>
    %cst_23 = arith.constant 0.000000e+00 : f32
    %30 = vector.broadcast %cst_23 : f32 to vector<256x256xf32>
    %31 = arith.maximumf %29, %30 : vector<256x256xf32>
    %32 = arith.truncf %31 : vector<256x256xf32> to vector<256x256xbf16>
    %c0_24 = arith.constant 0 : index
    %c0_25 = arith.constant 0 : index
    %33 = vector.load %arg10[%c0_24, %c0_25] : memref<256x128xbf16, #tpu.memory_space<vmem>>, vector<256x128xbf16>
    %cst_26 = arith.constant dense<0.000000e+00> : vector<256x128xf32>
    %34 = tpu.matmul %32, %33, %cst_26 {dimension_numbers = #tpu.dot_dimension_numbers<[1], [0], [0], [1], [0, 0, 1, 1], [], []>} : vector<256x256xbf16>, vector<256x128xbf16>, vector<256x128xf32> -> vector<256x128xf32>
    %c0_27 = arith.constant 0 : index
    %c0_28 = arith.constant 0 : index
    %35 = vector.load %arg11[%c0_27, %c0_28] : memref<1x128xf32, #tpu.memory_space<vmem>>, vector<1x128xf32>
    %36 = vector.broadcast %35 : vector<1x128xf32> to vector<256x128xf32>
    %37 = arith.addf %34, %36 : vector<256x128xf32>
    %cst_29 = arith.constant 0.000000e+00 : f32
    %38 = vector.broadcast %cst_29 : f32 to vector<256x128xf32>
    %39 = arith.maximumf %37, %38 : vector<256x128xf32>
    %40 = arith.truncf %39 : vector<256x128xf32> to vector<256x128xbf16>
    %c0_30 = arith.constant 0 : index
    %c0_31 = arith.constant 0 : index
    %41 = vector.load %arg12[%c0_30, %c0_31] : memref<128x128xbf16, #tpu.memory_space<vmem>>, vector<128x128xbf16>
    %cst_32 = arith.constant dense<0.000000e+00> : vector<256x128xf32>
    %42 = tpu.matmul %40, %41, %cst_32 {dimension_numbers = #tpu.dot_dimension_numbers<[1], [0], [0], [1], [0, 0, 1, 1], [], []>} : vector<256x128xbf16>, vector<128x128xbf16>, vector<256x128xf32> -> vector<256x128xf32>
    %c0_33 = arith.constant 0 : index
    %c0_34 = arith.constant 0 : index
    %43 = vector.load %arg13[%c0_33, %c0_34] : memref<1x128xf32, #tpu.memory_space<vmem>>, vector<1x128xf32>
    %44 = vector.broadcast %43 : vector<1x128xf32> to vector<256x128xf32>
    %45 = arith.addf %42, %44 : vector<256x128xf32>
    %46 = arith.truncf %45 : vector<256x128xf32> to vector<256x128xbf16>
    %c0_35 = arith.constant 0 : index
    %c0_36 = arith.constant 0 : index
    %47 = vector.load %arg14[%c0_35, %c0_36] : memref<256x128xbf16, #tpu.memory_space<vmem>>, vector<256x128xbf16>
    tpu.vector_store %arg14[%c0_35, %c0_36], %46 {strides = array<i32>} : memref<256x128xbf16, #tpu.memory_space<vmem>>, vector<256x128xbf16>,
    return
  }
  func.func @transform_0(%arg0: i32) -> (i32, i32) {
    %c0_i32 = arith.constant 0 : i32
    %c0_i32_0 = arith.constant 0 : i32
    return %arg0, %c0_i32 : i32, i32
  }
  func.func @transform_1(%arg0: i32) -> (i32, i32) {
    %c0_i32 = arith.constant 0 : i32
    %c0_i32_0 = arith.constant 0 : i32
    %c0_i32_1 = arith.constant 0 : i32
    return %c0_i32, %c0_i32_0 : i32, i32
  }
  func.func @transform_2(%arg0: i32) -> (i32, i32) {
    %c0_i32 = arith.constant 0 : i32
    %c0_i32_0 = arith.constant 0 : i32
    %c0_i32_1 = arith.constant 0 : i32
    return %c0_i32, %c0_i32_0 : i32, i32
  }
  func.func @transform_3(%arg0: i32) -> (i32, i32) {
    %c0_i32 = arith.constant 0 : i32
    %c0_i32_0 = arith.constant 0 : i32
    %c0_i32_1 = arith.constant 0 : i32
    return %c0_i32, %c0_i32_0 : i32, i32
  }
  func.func @transform_4(%arg0: i32) -> (i32, i32) {
    %c0_i32 = arith.constant 0 : i32
    %c0_i32_0 = arith.constant 0 : i32
    %c0_i32_1 = arith.constant 0 : i32
    return %c0_i32, %c0_i32_0 : i32, i32
  }
  func.func @transform_5(%arg0: i32) -> (i32, i32) {
    %c0_i32 = arith.constant 0 : i32
    %c0_i32_0 = arith.constant 0 : i32
    %c0_i32_1 = arith.constant 0 : i32
    return %c0_i32, %c0_i32_0 : i32, i32
  }
  func.func @transform_6(%arg0: i32) -> (i32, i32) {
    %c0_i32 = arith.constant 0 : i32
    %c0_i32_0 = arith.constant 0 : i32
    %c0_i32_1 = arith.constant 0 : i32
    return %c0_i32, %c0_i32_0 : i32, i32
  }
  func.func @transform_7(%arg0: i32) -> (i32, i32) {
    %c0_i32 = arith.constant 0 : i32
    %c0_i32_0 = arith.constant 0 : i32
    %c0_i32_1 = arith.constant 0 : i32
    return %c0_i32, %c0_i32_0 : i32, i32
  }
  func.func @transform_8(%arg0: i32) -> (i32, i32) {
    %c0_i32 = arith.constant 0 : i32
    %c0_i32_0 = arith.constant 0 : i32
    %c0_i32_1 = arith.constant 0 : i32
    return %c0_i32, %c0_i32_0 : i32, i32
  }
  func.func @transform_9(%arg0: i32) -> (i32, i32) {
    %c0_i32 = arith.constant 0 : i32
    %c0_i32_0 = arith.constant 0 : i32
    %c0_i32_1 = arith.constant 0 : i32
    return %c0_i32, %c0_i32_0 : i32, i32
  }
  func.func @transform_10(%arg0: i32) -> (i32, i32) {
    %c0_i32 = arith.constant 0 : i32
    %c0_i32_0 = arith.constant 0 : i32
    %c0_i32_1 = arith.constant 0 : i32
    return %c0_i32, %c0_i32_0 : i32, i32
  }
  func.func @transform_11(%arg0: i32) -> (i32, i32) {
    %c0_i32 = arith.constant 0 : i32
    %c0_i32_0 = arith.constant 0 : i32
    %c0_i32_1 = arith.constant 0 : i32
    return %c0_i32, %c0_i32_0 : i32, i32
  }
  func.func @transform_12(%arg0: i32) -> (i32, i32) {
    %c0_i32 = arith.constant 0 : i32
    %c0_i32_0 = arith.constant 0 : i32
    %c0_i32_1 = arith.constant 0 : i32
    return %c0_i32, %c0_i32_0 : i32, i32
  }
  func.func @transform_13(%arg0: i32) -> (i32, i32) {
    %c0_i32 = arith.constant 0 : i32
    %c0_i32_0 = arith.constant 0 : i32
    return %arg0, %c0_i32 : i32, i32
  }
}

</mosaic_0001>

<bundles_post_ra>
// kernel: bignet_forward.1
= control target key start
LH: loop header
LB: loop body
LE: loop exit
PB: predicated region body
PF: predicated region fallthrough
CT: control target
= control target key end

     0   :  { %18 = vsyncpa [#allocation3], 0  ;;  %s4310_s0 = inlined_call_operand.vmem [shape: bf16[256,32], index: 0, kind: input, shape index: {}]   ;;  %s4311_s1 = inlined_call_operand.vmem [shape: bf16[32,256], index: 1, kind: input, shape index: {}]   ;;  %s4312_s2 = inlined_call_operand.vmem [shape: f32[1,256], index: 2, kind: input, shape index: {}]   ;;  %s4313_s3 = inlined_call_operand.hbm [shape: bf16[256,256], index: 3, kind: input, shape index: {}]   ;;  %s4314_s4 = inlined_call_operand.vmem [shape: f32[1,256], index: 4, kind: input, shape index: {}]   ;;  %s4315_s5 = inlined_call_operand.hbm [shape: bf16[256,256], index: 5, kind: input, shape index: {}]   ;;  %s4316_s6 = inlined_call_operand.vmem [shape: f32[1,256], index: 6, kind: input, shape index: {}]   ;;  %s4317_s7 = inlined_call_operand.hbm [shape: bf16[256,256], index: 7, kind: input, shape index: {}]   ;;  %s4318_s8 = inlined_call_operand.vmem [shape: f32[1,256], index: 8, kind: input, shape index: {}]   ;;  %s4319_s9 = inlined_call_operand.vmem [shape: bf16[256,128], index: 9, kind: input, shape index: {}]   ;;  %s4320_s10 = inlined_call_operand.vmem [shape: f32[1,128], index: 10, kind: input, shape index: {}]   ;;  %s4321_s11 = inlined_call_operand.hbm [shape: bf16[128,128], index: 11, kind: input, shape index: {}]   ;;  %s4322_s12 = inlined_call_operand.vmem [shape: f32[1,128], index: 12, kind: input, shape index: {}]   ;;  %s4323_s13 = inlined_call_operand.vmem [shape: bf16[256,128], index: 13, kind: output, shape index: {}]  }
   0x1   :  { %19 = vsyncpa [#allocation5], 0 }
   0x2   :  { %20 = vsyncpa [#allocation8], 0  ;;  %s3602_s25 = smov [#allocation4]   ;;  %s3603_s27 = smov [#allocation2]  }
   0x3   :  { %s46_s26 = sshll.u32 %s3602_s25, 4  ;;  %s32_s28 = sshll.u32 %s3603_s27, 4  ;;  %s47_s26 = int_to_ptr.vmem [resolvable:$true] %s46_s26  ;;  %s3681_s28 = int_to_ptr.vmem [resolvable:$true] %s32_s28 }
   0x4   :  { %s3508_s14 = scalar_lea.hbm %s4315_s5, 4096 }
   0x5   :  { %p3509_p0 = scmp.ne.s32.totalorder %s4315_s5, %s3508_s14  ;;  %p3512_p1 = scmp.lt.u32.totalorder %s3508_s14, %s4315_s5 }
   0x7   :  { %p3514_p2 = pnand %p3512_p1, %p3509_p0 }
   0x9   :  { %3517 = shalt.err (!%p3514_p2)
}
   0xa   :  { %s3518_s19 = scalar_lea.vmem %s47_s26, 4096  ;;  %p3523_p4 = scmp.lt.s32.totalorder %s47_s26, %s47_s26 }
   0xb   :  { %p3519_p3 = scmp.ne.s32.totalorder %s47_s26, %s3518_s19  ;;  %p3524_p5 = scmp.lt.s32.totalorder %s3518_s19, %s3518_s19 }
   0xd   :  { %p3525_p6 = por %p3524_p5, %p3523_p4 }
   0xf   :  { %p3526_p7 = pnand %p3525_p6, %p3519_p3 }
  0x11   :  { %3529 = shalt.err (!%p3526_p7)
}
  0x12   :  { %s3604_s20 = smov 128   ;;  %s3605_s21 = smov 8  }
  0x13   :  { %52 = dma.hbm_to_vmem [thread:$0]  %s4315_s5, 4096, %s47_s26, [#allocation5], %s3604_s20, %s3604_s20, %s3605_s21  }
  0x14   :  { %s3530_s27 = scalar_lea.hbm %s4313_s3, 4096 }
  0x15   :  { %p3531_p8 = scmp.ne.s32.totalorder %s4313_s3, %s3530_s27  ;;  %p3534_p9 = scmp.lt.u32.totalorder %s3530_s27, %s4313_s3 }
  0x17   :  { %p3536_p10 = pnand %p3534_p9, %p3531_p8 }
  0x19   :  { %3539 = shalt.err (!%p3536_p10)
}
  0x1a   :  { %s3540_s16 = scalar_lea.vmem %s3681_s28, 4096  ;;  %p3545_p12 = scmp.lt.s32.totalorder %s3681_s28, %s3681_s28 }
  0x1b   :  { %p3541_p11 = scmp.ne.s32.totalorder %s3681_s28, %s3540_s16  ;;  %p3546_p13 = scmp.lt.s32.totalorder %s3540_s16, %s3540_s16 }
  0x1d   :  { %p3547_p0 = por %p3546_p13, %p3545_p12 }
  0x1f   :  { %p3548_p1 = pnand %p3547_p0, %p3541_p11 }
  0x21   :  { %3551 = shalt.err (!%p3548_p1)
}
  0x22   :  { %38 = dma.hbm_to_vmem [thread:$0]  %s4313_s3, 4096, %s3681_s28, [#allocation3], %s3604_s20, %s3604_s20, %s3605_s21  }
  0x23   :  { %s3606_s17 = smov [#allocation6]   ;;  %s3607_s19 = smov [#allocation7]  }
  0x24   :  { %s60_s18 = sshll.u32 %s3606_s17, 4  ;;  %s78_s22 = sshll.u32 %s3607_s19, 4  ;;  %s61_s18 = int_to_ptr.vmem [resolvable:$true] %s60_s18  ;;  %s3718_s22 = int_to_ptr.vmem [resolvable:$true] %s78_s22 }
  0x25   :  { %s3552_s25 = scalar_lea.hbm %s4317_s7, 4096 }
  0x26   :  { %p3553_p2 = scmp.ne.s32.totalorder %s4317_s7, %s3552_s25  ;;  %p3556_p3 = scmp.lt.u32.totalorder %s3552_s25, %s4317_s7 }
  0x28   :  { %p3558_p4 = pnand %p3556_p3, %p3553_p2 }
  0x2a   :  { %3561 = shalt.err (!%p3558_p4)
}
  0x2b   :  { %s3562_s3 = scalar_lea.vmem %s61_s18, 4096  ;;  %p3567_p6 = scmp.lt.s32.totalorder %s61_s18, %s61_s18 }
  0x2c   :  { %p3563_p5 = scmp.ne.s32.totalorder %s61_s18, %s3562_s3  ;;  %p3568_p7 = scmp.lt.s32.totalorder %s3562_s3, %s3562_s3 }
  0x2e   :  { %p3569_p8 = por %p3568_p7, %p3567_p6 }
  0x30   :  { %p3570_p9 = pnand %p3569_p8, %p3563_p5 }
  0x32   :  { %3573 = shalt.err (!%p3570_p9)
}
  0x33   :  { %66 = dma.hbm_to_vmem [thread:$0]  %s4317_s7, 4096, %s61_s18, [#allocation5], %s3604_s20, %s3604_s20, %s3605_s21  }
  0x34   :  { %s3574_s26 = scalar_lea.hbm %s4321_s11, 1024 }
  0x35   :  { %p3575_p10 = scmp.ne.s32.totalorder %s4321_s11, %s3574_s26  ;;  %p3578_p11 = scmp.lt.u32.totalorder %s3574_s26, %s4321_s11 }
  0x37   :  { %p3580_p12 = pnand %p3578_p11, %p3575_p10 }
  0x39   :  { %3583 = shalt.err (!%p3580_p12)
}
  0x3a   :  { %s3584_s25 = scalar_lea.vmem %s3718_s22, 1024  ;;  %p3589_p0 = scmp.lt.s32.totalorder %s3718_s22, %s3718_s22 }
  0x3b   :  { %p3585_p13 = scmp.ne.s32.totalorder %s3718_s22, %s3584_s25  ;;  %p3590_p1 = scmp.lt.s32.totalorder %s3584_s25, %s3584_s25 }
  0x3d   :  { %p3591_p2 = por %p3590_p1, %p3589_p0 }
  0x3f   :  { %p3592_p3 = pnand %p3591_p2, %p3585_p13 }
  0x41   :  { %3595 = shalt.err (!%p3592_p3)
}
  0x42   :  { %s3608_s7 = smov 64   ;;  %s3609_s20 = smov 4  }
  0x43   :  { %84 = dma.hbm_to_vmem [thread:$0]  %s4321_s11, 1024, %s3718_s22, [#allocation8], %s3608_s7, %s3608_s7, %s3609_s20  }
  0x44   :  { %3596 = dma.done.wait [#allocation3], 4096  }
  0x45   :  { %3597 = vsyncadd [#allocation3], 4294963200 }
  0x46   :  { %3598 = dma.done.wait [#allocation5], 8192  }
  0x47   :  { %3599 = vsyncadd [#allocation5], 4294959104 }
  0x48   :  { %3600 = dma.done.wait [#allocation8], 1024  }
  0x49   :  { %3601 = vsyncadd [#allocation8], 4294966272  ;;  %v3610_v0 = vmov 0   ;;  %v3318_v1 = vld [vmem:[%s4311_s1 + $0x4] ss:$8 sps:$4 sm:$0xff]   ;;  %vm248_vm0 = vcmask 261120   ;;  %v138_v55 = vlaneseq }
  0x4a   :  { %329 = vmatprep.mubr.bf16.mxu0 %v3610_v0  ;;  %v3320_v2 = vld [vmem:[%s4311_s1] ss:$8 sps:$4 sm:$0xff]   ;;  %297 = vmatprep.subr.bf16.mxu0 %v3318_v1  ;;  %v3321_v3 = vld [vmem:[%s4311_s1 + $0x14] ss:$8 sps:$4 sm:$0xff]   ;;  %v3323_v4 = vld [vmem:[%s4311_s1 + $0x10] ss:$8 sps:$4 sm:$0xff]  }
  0x4b   :  { %298 = vmatpush1.bf16.msra.mxu0 %v3320_v2  ;;  %v3324_v5 = vld [vmem:[%s4310_s0] sm:$0xff]   ;;  %v3325_v6 = vld [vmem:[%s4310_s0 + $0x8] sm:$0xff]   ;;  %v3343_v9 = vld [vmem:[#allocation2 + $0x14] ss:$8 sps:$4 sm:$0xff]   ;;  %v139_v58 = vshrl.u32 %v138_v55, 7 }
  0x4c   :  { %299 = vmatprep.subr.bf16.mxu0 %v3321_v3  ;;  %v3340_v7 = vld [vmem:[#allocation2 + $0x4] ss:$8 sps:$4 sm:$0xff]   ;;  %v3342_v8 = vld [vmem:[#allocation2] ss:$8 sps:$4 sm:$0xff]   ;;  %v3326_v10 = vld [vmem:[%s4310_s0 + $0x10] sm:$0xff]  }
  0x4d   :  { %790 = vmatprep.subr.bf16.mxu1 %v3340_v7  ;;  %v3345_v11 = vld [vmem:[#allocation2 + $0x10] ss:$8 sps:$4 sm:$0xff]   ;;  %v3346_v12 = vld [vmem:[#allocation2 + $0x24] ss:$8 sps:$4 sm:$0xff]   ;;  %v3348_v13 = vld [vmem:[#allocation2 + $0x20] ss:$8 sps:$4 sm:$0xff]  }
  0x4e   :  { %791 = vmatpush1.bf16.msra.mxu1 %v3342_v8  ;;  %v3349_v14 = vld [vmem:[#allocation2 + $0x34] ss:$8 sps:$4 sm:$0xff]   ;;  %v3351_v16 = vld [vmem:[#allocation2 + $0x30] ss:$8 sps:$4 sm:$0xff]   ;;  %v3352_v17 = vld [vmem:[#allocation2 + $0x44] ss:$8 sps:$4 sm:$0xff]  }
  0x4f   :  { %300 = vmatpush1.bf16.msra.mxu0 %v3323_v4  ;;  %792 = vmatprep.subr.bf16.mxu1 %v3343_v9  ;;  %v3327_v15 = vld [vmem:[%s4310_s0 + $0x18] sm:$0xff]   ;;  %v3354_v18 = vld [vmem:[#allocation2 + $0x40] ss:$8 sps:$4 sm:$0xff]   ;;  %v3358_v22 = vld [vmem:[#allocation2 + $0x64] ss:$8 sps:$4 sm:$0xff]   ;;  %v3844_v59 = vsub.s32 0, %v139_v58 }
  0x50   :  { %v3355_v19 = vld [vmem:[#allocation2 + $0x54] ss:$8 sps:$4 sm:$0xff]   ;;  %v3328_v20 = vld [vmem:[%s4310_s0 + $0x20] sm:$0xff]   ;;  %v3357_v21 = vld [vmem:[#allocation2 + $0x50] ss:$8 sps:$4 sm:$0xff]   ;;  %v3849_v61 = vsub.s32 1, %v139_v58 }
  0x51   :  { %v3360_v23 = vld [vmem:[#allocation2 + $0x60] ss:$8 sps:$4 sm:$0xff]   ;;  %v3361_v24 = vld [vmem:[#allocation2 + $0x74] ss:$8 sps:$4 sm:$0xff]   ;;  %v3363_v26 = vld [vmem:[#allocation2 + $0x70] ss:$8 sps:$4 sm:$0xff]  }
  0x52   :  { %2828 = vmatmul.mubr.msk.bf16.vlgmr.msra.gmra.mrb[0].mxu0 %vm248_vm0, %v3324_v5  ;;  %793 = vmatpush1.bf16.msra.mxu1 %v3345_v11  ;;  %v3329_v25 = vld [vmem:[%s4310_s0 + $0x28] sm:$0xff]   ;;  %v3367_v29 = vld [vmem:[#allocation2 + $0x94] ss:$8 sps:$4 sm:$0xff]   ;;  %v3369_v31 = vld [vmem:[#allocation2 + $0x90] ss:$8 sps:$4 sm:$0xff]  }
  0x53   :  { %339 = vmatprep.mubr.bf16.mxu0 %v3610_v0  ;;  %794 = vmatprep.subr.bf16.mxu1 %v3346_v12  ;;  %v3364_v27 = vld [vmem:[#allocation2 + $0x84] ss:$8 sps:$4 sm:$0xff]   ;;  %v3366_v28 = vld [vmem:[#allocation2 + $0x80] ss:$8 sps:$4 sm:$0xff]   ;;  %v3330_v30 = vld [vmem:[%s4310_s0 + $0x30] sm:$0xff]  }
  0x54   :  { %v3370_v32 = vld [vmem:[#allocation2 + $0xa4] ss:$8 sps:$4 sm:$0xff]   ;;  %v3372_v33 = vld [vmem:[#allocation2 + $0xa0] ss:$8 sps:$4 sm:$0xff]   ;;  %v3373_v34 = vld [vmem:[#allocation2 + $0xb4] ss:$8 sps:$4 sm:$0xff]  }
  0x55   :  { %v3331_v35 = vld [vmem:[%s4310_s0 + $0x38] sm:$0xff]   ;;  %v3376_v37 = vld [vmem:[#allocation2 + $0xc4] ss:$8 sps:$4 sm:$0xff]   ;;  %v3378_v38 = vld [vmem:[#allocation2 + $0xc0] ss:$8 sps:$4 sm:$0xff]  }
  0x56   :  { %795 = vmatpush1.bf16.msra.mxu1 %v3348_v13  ;;  %v3375_v36 = vld [vmem:[#allocation2 + $0xb0] ss:$8 sps:$4 sm:$0xff]   ;;  %v3379_v39 = vld [vmem:[#allocation2 + $0xd4] ss:$8 sps:$4 sm:$0xff]   ;;  %v3332_v40 = vld [vmem:[%s4310_s0 + $0x40] sm:$0xff]  }
  0x57   :  { %796 = vmatprep.subr.bf16.mxu1 %v3349_v14  ;;  %v3333_v41 = vld [vmem:[%s4310_s0 + $0x48] sm:$0xff]   ;;  %v3334_v42 = vld [vmem:[%s4310_s0 + $0x50] sm:$0xff]   ;;  %v3335_v44 = vld [vmem:[%s4310_s0 + $0x58] sm:$0xff]  }
  0x58   :  { %v3381_v43 = vld [vmem:[#allocation2 + $0xd0] ss:$8 sps:$4 sm:$0xff]   ;;  %v3382_v45 = vld [vmem:[#allocation2 + $0xe4] ss:$8 sps:$4 sm:$0xff]   ;;  %v3384_v46 = vld [vmem:[#allocation2 + $0xe0] ss:$8 sps:$4 sm:$0xff]  }
  0x59   :  { %v3385_v47 = vld [vmem:[#allocation2 + $0xf4] ss:$8 sps:$4 sm:$0xff]   ;;  %v3387_v48 = vld [vmem:[#allocation2 + $0xf0] ss:$8 sps:$4 sm:$0xff]   ;;  %v3336_v49 = vld [vmem:[%s4310_s0 + $0x60] sm:$0xff]  }
  0x5a   :  { %2829 = vmatmul.mubr.msk.bf16.gmra.mrb[4].mxu0 %vm248_vm0, %v3325_v6  ;;  %797 = vmatpush1.bf16.msra.mxu1 %v3351_v16  ;;  %v3337_v50 = vld [vmem:[%s4310_s0 + $0x68] sm:$0xff]   ;;  %v3338_v51 = vld [vmem:[%s4310_s0 + $0x70] sm:$0xff]   ;;  %v3339_v52 = vld [vmem:[%s4310_s0 + $0x78] sm:$0xff]  }
  0x5b   :  { %349 = vmatprep.mubr.bf16.mxu0 %v3610_v0  ;;  %798 = vmatprep.subr.bf16.mxu1 %v3352_v17  ;;  %v3388_v53 = vld [vmem:[#allocation4] ss:$8 sps:$4 sm:$0xff]   ;;  %v3390_v54 = vld [vmem:[#allocation4 + $0x4] ss:$8 sps:$4 sm:$0xff]   ;;  %v3391_v56 = vld [vmem:[#allocation4 + $0x10] ss:$8 sps:$4 sm:$0xff]  }
  0x5c   :  { %1283 = vmatprep.subr.bf16.mxu0 %v3390_v54  ;;  %v3393_v57 = vld [vmem:[#allocation4 + $0x14] ss:$8 sps:$4 sm:$0xff]   ;;  %v136_v60 = vld [vmem:[%s4312_s2] sm:$0x3]  ;;  %v3396_v63 = vld [vmem:[#allocation4 + $0x24] ss:$8 sps:$4 sm:$0xff]  }
  0x5d   :  { %1284 = vmatpush1.bf16.msra.mxu0 %v3388_v53  ;;  %v3394_v62 = vld [vmem:[#allocation4 + $0x20] ss:$8 sps:$4 sm:$0xff]   ;;  %v3855_v1 = vrot.slane %v136_v60, %v3849_v61  ;;  %v3397_v3 = vld [vmem:[#allocation4 + $0x30] ss:$8 sps:$4 sm:$0xff]   ;;  %v3399_v4 = vld [vmem:[#allocation4 + $0x34] ss:$8 sps:$4 sm:$0xff]  }
  0x5e   :  { %799 = vmatpush1.bf16.msra.mxu1 %v3354_v18  ;;  %1285 = vmatprep.subr.bf16.mxu0 %v3393_v57  ;;  %v3400_v11 = vld [vmem:[#allocation4 + $0x40] ss:$8 sps:$4 sm:$0xff]   ;;  %v3402_v12 = vld [vmem:[#allocation4 + $0x44] ss:$8 sps:$4 sm:$0xff]   ;;  %v3405_v14 = vld [vmem:[#allocation4 + $0x54] ss:$8 sps:$4 sm:$0xff]  }
  0x5f   :  { %800 = vmatprep.subr.bf16.mxu1 %v3355_v19 }
  0x61   :  { %1286 = vmatpush1.bf16.msra.mxu0 %v3391_v56  ;;  %v3415_v56 = vld [vmem:[#allocation4 + $0x90] ss:$8 sps:$4 sm:$0xff]  }
  0x62   :  { %2830 = vmatmul.mubr.msk.bf16.gmra.mrb[8].mxu0 %vm248_vm0, %v3326_v10  ;;  %801 = vmatpush1.bf16.msra.mxu1 %v3357_v21 }
  0x63   :  { %359 = vmatprep.mubr.bf16.mxu0 %v3610_v0  ;;  %802 = vmatprep.subr.bf16.mxu1 %v3358_v22 }
  0x64   :  { %1287 = vmatprep.subr.bf16.mxu0 %v3396_v63 }
  0x65   :  { %1288 = vmatpush1.bf16.msra.mxu0 %v3394_v62 }
  0x66   :  { %803 = vmatpush1.bf16.msra.mxu1 %v3360_v23  ;;  %1289 = vmatprep.subr.bf16.mxu0 %v3399_v4  ;;  %v3408_v23 = vld [vmem:[#allocation4 + $0x64] ss:$8 sps:$4 sm:$0xff]  }
  0x67   :  { %804 = vmatprep.subr.bf16.mxu1 %v3361_v24 }
  0x69   :  { %1290 = vmatpush1.bf16.msra.mxu0 %v3397_v3 }
  0x6a   :  { %2831 = vmatmul.mubr.msk.bf16.gmra.mrb[12].mxu0 %vm248_vm0, %v3327_v15  ;;  %805 = vmatpush1.bf16.msra.mxu1 %v3363_v26 }
  0x6b   :  { %369 = vmatprep.mubr.bf16.mxu0 %v3610_v0  ;;  %806 = vmatprep.subr.bf16.mxu1 %v3364_v27 }
  0x6c   :  { %1291 = vmatprep.subr.bf16.mxu0 %v3402_v12 }
  0x6d   :  { %1292 = vmatpush1.bf16.msra.mxu0 %v3400_v11 }
  0x6e   :  { %807 = vmatpush1.bf16.msra.mxu1 %v3366_v28  ;;  %1293 = vmatprep.subr.bf16.mxu0 %v3405_v14  ;;  %v3421_v14 = vld [vmem:[#allocation4 + $0xb0] ss:$8 sps:$4 sm:$0xff]  }
  0x6f   :  { %808 = vmatprep.subr.bf16.mxu1 %v3367_v29 }
  0x72   :  { %2832 = vmatmul.mubr.msk.bf16.gmra.mrb[16].mxu0 %vm248_vm0, %v3328_v20  ;;  %809 = vmatpush1.bf16.msra.mxu1 %v3369_v31  ;;  %v3403_v20 = vld [vmem:[#allocation4 + $0x50] ss:$8 sps:$4 sm:$0xff]  }
  0x73   :  { %379 = vmatprep.mubr.bf16.mxu0 %v3610_v0  ;;  %810 = vmatprep.subr.bf16.mxu1 %v3370_v32  ;;  %v3411_v32 = vld [vmem:[#allocation4 + $0x74] ss:$8 sps:$4 sm:$0xff]  }
  0x74   :  { %1294 = vmatpush1.bf16.msra.mxu0 %v3403_v20 }
  0x75   :  { %1295 = vmatprep.subr.bf16.mxu0 %v3408_v23 }
  0x76   :  { %811 = vmatpush1.bf16.msra.mxu1 %v3372_v33 }
  0x77   :  { %812 = vmatprep.subr.bf16.mxu1 %v3373_v34 }
  0x7a   :  { %2833 = vmatmul.mubr.msk.bf16.gmra.mrb[20].mxu0 %vm248_vm0, %v3329_v25  ;;  %813 = vmatpush1.bf16.msra.mxu1 %v3375_v36 }
  0x7b   :  { %389 = vmatprep.mubr.bf16.mxu0 %v3610_v0  ;;  %814 = vmatprep.subr.bf16.mxu1 %v3376_v37 }
  0x7e   :  { %815 = vmatpush1.bf16.msra.mxu1 %v3378_v38  ;;  %v3409_v38 = vld [vmem:[#allocation4 + $0x70] ss:$8 sps:$4 sm:$0xff]  }
  0x7f   :  { %816 = vmatprep.subr.bf16.mxu1 %v3379_v39 }
  0x82   :  { %2834 = vmatmul.mubr.msk.bf16.gmra.mrb[24].mxu0 %vm248_vm0, %v3330_v30  ;;  %817 = vmatpush1.bf16.msra.mxu1 %v3381_v43  ;;  %v3406_v30 = vld [vmem:[#allocation4 + $0x60] ss:$8 sps:$4 sm:$0xff]  }
  0x83   :  { %399 = vmatprep.mubr.bf16.mxu0 %v3610_v0  ;;  %818 = vmatprep.subr.bf16.mxu1 %v3382_v45 }
  0x84   :  { %1296 = vmatpush1.bf16.msra.mxu0 %v3406_v30 }
  0x85   :  { %1297 = vmatprep.subr.bf16.mxu0 %v3411_v32  ;;  %v3427_v32 = vld [vmem:[#allocation4 + $0xd0] ss:$8 sps:$4 sm:$0xff]  }
  0x86   :  { %819 = vmatpush1.bf16.msra.mxu1 %v3384_v46 }
  0x87   :  { %820 = vmatprep.subr.bf16.mxu1 %v3385_v47 }
  0x88   :  { %1298 = vmatpush1.bf16.msra.mxu0 %v3409_v38 }
  0x8a   :  { %2835 = vmatmul.mubr.msk.bf16.gmra.mrb[28].mxu0 %vm248_vm0, %v3331_v35  ;;  %821 = vmatpush1.bf16.msra.mxu1 %v3387_v48  ;;  %v3412_v48 = vld [vmem:[#allocation4 + $0x80] ss:$8 sps:$4 sm:$0xff]  }
  0x8b   :  { %409 = vmatprep.mubr.bf16.mxu0 %v3610_v0 }
  0x92   :  { %2836 = vmatmul.mubr.msk.bf16.gmra.mrb[32].mxu0 %vm248_vm0, %v3332_v40 }
  0x93   :  { %419 = vmatprep.mubr.bf16.mxu0 %v3610_v0 }
  0x9a   :  { %2837 = vmatmul.mubr.msk.bf16.gmra.mrb[36].mxu0 %vm248_vm0, %v3333_v41  ;;  %v3414_v41 = vld [vmem:[#allocation4 + $0x84] ss:$8 sps:$4 sm:$0xff]  }
  0x9b   :  { %429 = vmatprep.mubr.bf16.mxu0 %v3610_v0  ;;  %1299 = vmatprep.subr.bf16.mxu0 %v3414_v41 }
  0x9c   :  { %1300 = vmatpush1.bf16.msra.mxu0 %v3412_v48 }
  0xa2   :  { %2838 = vmatmul.mubr.msk.bf16.gmra.mrb[40].mxu0 %vm248_vm0, %v3334_v42 }
  0xa3   :  { %439 = vmatprep.mubr.bf16.mxu0 %v3610_v0 }
  0xaa   :  { %2839 = vmatmul.mubr.msk.bf16.gmra.mrb[44].mxu0 %vm248_vm0, %v3335_v44 }
  0xab   :  { %449 = vmatprep.mubr.bf16.mxu0 %v3610_v0 }
  0xb2   :  { %2840 = vmatmul.mubr.msk.bf16.gmra.mrb[48].mxu0 %vm248_vm0, %v3336_v49 }
  0xb3   :  { %459 = vmatprep.mubr.bf16.mxu0 %v3610_v0 }
  0xba   :  { %2841 = vmatmul.mubr.msk.bf16.gmra.mrb[52].mxu0 %vm248_vm0, %v3337_v50  ;;  %v3417_v50 = vld [vmem:[#allocation4 + $0x94] ss:$8 sps:$4 sm:$0xff]  }
  0xbb   :  { %469 = vmatprep.mubr.bf16.mxu0 %v3610_v0  ;;  %1301 = vmatprep.subr.bf16.mxu0 %v3417_v50 }
  0xbc   :  { %1302 = vmatpush1.bf16.msra.mxu0 %v3415_v56 }
  0xc2   :  { %2842 = vmatmul.mubr.msk.bf16.gmra.mrb[56].mxu0 %vm248_vm0, %v3338_v51 }
  0xc3   :  { %479 = vmatprep.mubr.bf16.mxu0 %v3610_v0  ;;  %v3852_v0 = vrot.slane %v136_v60, %v3844_v59  ;;  %v3420_v60 = vld [vmem:[#allocation4 + $0xa4] ss:$8 sps:$4 sm:$0xff]  }
  0xc4   :  { %1303 = vmatprep.subr.bf16.mxu0 %v3420_v60 }
  0xca   :  { %2843 = vmatmul.mubr.msk.bf16.gmra.mrb[60].mxu0 %vm248_vm0, %v3339_v52 }
 0x125   :  { %v331_v2 = vpop.f32.mrb[0].mxu0 }
 0x126   :  { %v332_v5 = vadd.f32 %v331_v2, %v3852_v0  ;;  %v333_v6 = vpop.f32.mrb[1].mxu0 }
 0x127   :  { %v334_v7 = vadd.f32 %v333_v6, %v3855_v1  ;;  %v335_v8 = vpop.f32.mrb[2].mxu0  ;;  %v3418_v6 = vld [vmem:[#allocation4 + $0xa0] ss:$8 sps:$4 sm:$0xff]  }
 0x128   :  { %v336_v9 = vadd.f32 %v335_v8, %v3852_v0  ;;  %v337_v10 = vpop.f32.mrb[3].mxu0  ;;  %v490_v15 = vmax.f32 %v332_v5, 0.0  ;;  %v3423_v8 = vld [vmem:[#allocation4 + $0xb4] ss:$8 sps:$4 sm:$0xff]   ;;  %1304 = vmatpush1.bf16.msra.mxu0 %v3418_v6 }
 0x129   :  { %v338_v13 = vadd.f32 %v337_v10, %v3855_v1  ;;  %v491_v17 = vmax.f32 %v334_v7, 0.0  ;;  %1305 = vmatprep.subr.bf16.mxu0 %v3423_v8 }
 0x12a   :  { %v492_v16 = vmax.f32 %v336_v9, 0.0 }
 0x12b   :  { %v493_v18 = vmax.f32 %v338_v13, 0.0 }
 0x12c   :  { %v554_v19 = vpack.c.bf16 %v492_v16, %v490_v15  ;;  %1306 = vmatpush1.bf16.msra.mxu0 %v3421_v14 }
 0x12d   :  { %v341_v21 = vpop.f32.mrb[4].mxu0  ;;  %v555_v22 = vpack.c.bf16 %v493_v18, %v491_v17  ;;  %v3426_v17 = vld [vmem:[#allocation4 + $0xc4] ss:$8 sps:$4 sm:$0xff]  }
 0x12e   :  { %v342_v24 = vadd.f32 %v341_v21, %v3852_v0  ;;  %v343_v25 = vpop.f32.mrb[5].mxu0  ;;  %1307 = vmatprep.subr.bf16.mxu0 %v3426_v17 }
 0x12f   :  { %v344_v26 = vadd.f32 %v343_v25, %v3855_v1  ;;  %v345_v27 = vpop.f32.mrb[6].mxu0  ;;  %822 = vmatprep.mubr.bf16.mxu1 %v555_v22 }
 0x130   :  { %v346_v28 = vadd.f32 %v345_v27, %v3852_v0  ;;  %v347_v29 = vpop.f32.mrb[7].mxu0  ;;  %823 = vmatmul.mubr.bf16.vlgmr.msra.gmra.mrb[0].mxu1 %v554_v19  ;;  %v494_v33 = vmax.f32 %v342_v24, 0.0  ;;  %v3424_v24 = vld [vmem:[#allocation4 + $0xc0] ss:$8 sps:$4 sm:$0xff]  }
 0x131   :  { %v348_v31 = vadd.f32 %v347_v29, %v3855_v1  ;;  %v495_v35 = vmax.f32 %v344_v26, 0.0  ;;  %v3429_v26 = vld [vmem:[#allocation4 + $0xd4] ss:$8 sps:$4 sm:$0xff]   ;;  %1308 = vmatpush1.bf16.msra.mxu0 %v3424_v24 }
 0x132   :  { %v496_v34 = vmax.f32 %v346_v28, 0.0  ;;  %1309 = vmatprep.subr.bf16.mxu0 %v3429_v26 }
 0x133   :  { %v497_v36 = vmax.f32 %v348_v31, 0.0 }
 0x134   :  { %v556_v37 = vpack.c.bf16 %v496_v34, %v494_v33 }
 0x135   :  { %v557_v39 = vpack.c.bf16 %v497_v36, %v495_v35  ;;  %v351_v40 = vpop.f32.mrb[8].mxu0  ;;  %v3432_v35 = vld [vmem:[#allocation4 + $0xe4] ss:$8 sps:$4 sm:$0xff]   ;;  %1310 = vmatpush1.bf16.msra.mxu0 %v3427_v32 }
 0x136   :  { %v352_v42 = vadd.f32 %v351_v40, %v3852_v0  ;;  %v353_v43 = vpop.f32.mrb[9].mxu0  ;;  %1311 = vmatprep.subr.bf16.mxu0 %v3432_v35 }
 0x137   :  { %v354_v44 = vadd.f32 %v353_v43, %v3855_v1  ;;  %v355_v45 = vpop.f32.mrb[10].mxu0  ;;  %832 = vmatprep.mubr.bf16.mxu1 %v557_v39 }
 0x138   :  { %v356_v46 = vadd.f32 %v355_v45, %v3852_v0  ;;  %v357_v47 = vpop.f32.mrb[11].mxu0  ;;  %833 = vmatmul.mubr.bf16.gmra.mrb[4].mxu1 %v556_v37  ;;  %v498_v51 = vmax.f32 %v352_v42, 0.0  ;;  %v3430_v42 = vld [vmem:[#allocation4 + $0xe0] ss:$8 sps:$4 sm:$0xff]  }
 0x139   :  { %v358_v49 = vadd.f32 %v357_v47, %v3855_v1  ;;  %v499_v53 = vmax.f32 %v354_v44, 0.0  ;;  %1312 = vmatpush1.bf16.msra.mxu0 %v3430_v42 }
 0x13a   :  { %v500_v52 = vmax.f32 %v356_v46, 0.0 }
 0x13b   :  { %v501_v54 = vmax.f32 %v358_v49, 0.0 }
 0x13c   :  { %v558_v55 = vpack.c.bf16 %v500_v52, %v498_v51 }
 0x13d   :  { %v559_v57 = vpack.c.bf16 %v501_v54, %v499_v53  ;;  %v361_v58 = vpop.f32.mrb[12].mxu0 }
 0x13e   :  { %v362_v62 = vadd.f32 %v361_v58, %v3852_v0  ;;  %v363_v63 = vpop.f32.mrb[13].mxu0 }
 0x13f   :  { %v364_v2 = vadd.f32 %v363_v63, %v3855_v1  ;;  %v365_v3 = vpop.f32.mrb[14].mxu0  ;;  %842 = vmatprep.mubr.bf16.mxu1 %v559_v57 }
 0x140   :  { %v366_v4 = vadd.f32 %v365_v3, %v3852_v0  ;;  %v367_v5 = vpop.f32.mrb[15].mxu0  ;;  %843 = vmatmul.mubr.bf16.gmra.mrb[8].mxu1 %v558_v55  ;;  %v502_v9 = vmax.f32 %v362_v62, 0.0 }
 0x141   :  { %v368_v7 = vadd.f32 %v367_v5, %v3855_v1  ;;  %v503_v11 = vmax.f32 %v364_v2, 0.0 }
 0x142   :  { %v504_v10 = vmax.f32 %v366_v4, 0.0 }
 0x143   :  { %v505_v12 = vmax.f32 %v368_v7, 0.0 }
 0x144   :  { %v560_v13 = vpack.c.bf16 %v504_v10, %v502_v9 }
 0x145   :  { %v561_v15 = vpack.c.bf16 %v505_v12, %v503_v11  ;;  %v371_v16 = vpop.f32.mrb[16].mxu0 }
 0x146   :  { %v372_v18 = vadd.f32 %v371_v16, %v3852_v0  ;;  %v373_v19 = vpop.f32.mrb[17].mxu0 }
 0x147   :  { %v374_v20 = vadd.f32 %v373_v19, %v3855_v1  ;;  %v375_v21 = vpop.f32.mrb[18].mxu0  ;;  %852 = vmatprep.mubr.bf16.mxu1 %v561_v15 }
 0x148   :  { %v376_v22 = vadd.f32 %v375_v21, %v3852_v0  ;;  %v377_v23 = vpop.f32.mrb[19].mxu0  ;;  %853 = vmatmul.mubr.bf16.gmra.mrb[12].mxu1 %v560_v13  ;;  %v506_v27 = vmax.f32 %v372_v18, 0.0 }
 0x149   :  { %v378_v25 = vadd.f32 %v377_v23, %v3855_v1  ;;  %v507_v29 = vmax.f32 %v374_v20, 0.0 }
 0x14a   :  { %v508_v28 = vmax.f32 %v376_v22, 0.0 }
 0x14b   :  { %v509_v30 = vmax.f32 %v378_v25, 0.0 }
 0x14c   :  { %v562_v31 = vpack.c.bf16 %v508_v28, %v506_v27 }
 0x14d   :  { %v563_v33 = vpack.c.bf16 %v509_v30, %v507_v29  ;;  %v381_v34 = vpop.f32.mrb[20].mxu0 }
 0x14e   :  { %v382_v36 = vadd.f32 %v381_v34, %v3852_v0  ;;  %v383_v37 = vpop.f32.mrb[21].mxu0 }
 0x14f   :  { %v384_v38 = vadd.f32 %v383_v37, %v3855_v1  ;;  %v385_v39 = vpop.f32.mrb[22].mxu0  ;;  %862 = vmatprep.mubr.bf16.mxu1 %v563_v33 }
 0x150   :  { %v386_v40 = vadd.f32 %v385_v39, %v3852_v0  ;;  %v387_v41 = vpop.f32.mrb[23].mxu0  ;;  %863 = vmatmul.mubr.bf16.gmra.mrb[16].mxu1 %v562_v31  ;;  %v510_v44 = vmax.f32 %v382_v36, 0.0 }
 0x151   :  { %v388_v43 = vadd.f32 %v387_v41, %v3855_v1  ;;  %v511_v46 = vmax.f32 %v384_v38, 0.0 }
 0x152   :  { %v512_v45 = vmax.f32 %v386_v40, 0.0 }
 0x153   :  { %v513_v47 = vmax.f32 %v388_v43, 0.0 }
 0x154   :  { %v564_v48 = vpack.c.bf16 %v512_v45, %v510_v44 }
 0x155   :  { %v565_v49 = vpack.c.bf16 %v513_v47, %v511_v46  ;;  %v391_v50 = vpop.f32.mrb[24].mxu0 }
 0x156   :  { %v392_v51 = vadd.f32 %v391_v50, %v3852_v0  ;;  %v393_v52 = vpop.f32.mrb[25].mxu0 }
 0x157   :  { %v394_v53 = vadd.f32 %v393_v52, %v3855_v1  ;;  %v395_v54 = vpop.f32.mrb[26].mxu0  ;;  %872 = vmatprep.mubr.bf16.mxu1 %v565_v49 }
 0x158   :  { %v396_v55 = vadd.f32 %v395_v54, %v3852_v0  ;;  %v397_v56 = vpop.f32.mrb[27].mxu0  ;;  %873 = vmatmul.mubr.bf16.gmra.mrb[20].mxu1 %v564_v48  ;;  %v514_v58 = vmax.f32 %v392_v51, 0.0 }
 0x159   :  { %v398_v57 = vadd.f32 %v397_v56, %v3855_v1  ;;  %v515_v62 = vmax.f32 %v394_v53, 0.0 }
 0x15a   :  { %v516_v60 = vmax.f32 %v396_v55, 0.0 }
 0x15b   :  { %v517_v63 = vmax.f32 %v398_v57, 0.0 }
 0x15c   :  { %v566_v2 = vpack.c.bf16 %v516_v60, %v514_v58 }
 0x15d   :  { %v567_v3 = vpack.c.bf16 %v517_v63, %v515_v62  ;;  %v401_v4 = vpop.f32.mrb[28].mxu0 }
 0x15e   :  { %v402_v5 = vadd.f32 %v401_v4, %v3852_v0  ;;  %v403_v6 = vpop.f32.mrb[29].mxu0 }
 0x15f   :  { %v404_v7 = vadd.f32 %v403_v6, %v3855_v1  ;;  %v405_v8 = vpop.f32.mrb[30].mxu0  ;;  %882 = vmatprep.mubr.bf16.mxu1 %v567_v3 }
 0x160   :  { %v406_v9 = vadd.f32 %v405_v8, %v3852_v0  ;;  %v407_v10 = vpop.f32.mrb[31].mxu0  ;;  %883 = vmatmul.mubr.bf16.gmra.mrb[24].mxu1 %v566_v2  ;;  %v518_v12 = vmax.f32 %v402_v5, 0.0 }
 0x161   :  { %v408_v11 = vadd.f32 %v407_v10, %v3855_v1  ;;  %v519_v14 = vmax.f32 %v404_v7, 0.0 }
 0x162   :  { %v520_v13 = vmax.f32 %v406_v9, 0.0 }
 0x163   :  { %v521_v15 = vmax.f32 %v408_v11, 0.0 }
 0x164   :  { %v568_v16 = vpack.c.bf16 %v520_v13, %v518_v12 }
 0x165   :  { %v569_v17 = vpack.c.bf16 %v521_v15, %v519_v14  ;;  %v411_v18 = vpop.f32.mrb[32].mxu0 }
 0x166   :  { %v412_v19 = vadd.f32 %v411_v18, %v3852_v0  ;;  %v413_v20 = vpop.f32.mrb[33].mxu0 }
 0x167   :  { %v414_v21 = vadd.f32 %v413_v20, %v3855_v1  ;;  %v415_v22 = vpop.f32.mrb[34].mxu0  ;;  %892 = vmatprep.mubr.bf16.mxu1 %v569_v17 }
 0x168   :  { %v416_v23 = vadd.f32 %v415_v22, %v3852_v0  ;;  %v417_v24 = vpop.f32.mrb[35].mxu0  ;;  %893 = vmatmul.mubr.bf16.gmra.mrb[28].mxu1 %v568_v16  ;;  %v522_v26 = vmax.f32 %v412_v19, 0.0 }
 0x169   :  { %v418_v25 = vadd.f32 %v417_v24, %v3855_v1  ;;  %v523_v28 = vmax.f32 %v414_v21, 0.0  ;;  %v3435_v21 = vld [vmem:[#allocation4 + $0xf4] ss:$8 sps:$4 sm:$0xff]  }
 0x16a   :  { %v524_v27 = vmax.f32 %v416_v23, 0.0  ;;  %v3433_v23 = vld [vmem:[#allocation4 + $0xf0] ss:$8 sps:$4 sm:$0xff]   ;;  %1313 = vmatprep.subr.bf16.mxu0 %v3435_v21  ;;  %v3447_v21 = vld [vmem:[#allocation6 + $0x34] ss:$8 sps:$4 sm:$0xff]  }
 0x16b   :  { %v525_v29 = vmax.f32 %v418_v25, 0.0  ;;  %1314 = vmatpush1.bf16.msra.mxu0 %v3433_v23 }
 0x16c   :  { %v570_v30 = vpack.c.bf16 %v524_v27, %v522_v26 }
 0x16d   :  { %v571_v31 = vpack.c.bf16 %v525_v29, %v523_v28  ;;  %v421_v32 = vpop.f32.mrb[36].mxu0 }
 0x16e   :  { %v422_v33 = vadd.f32 %v421_v32, %v3852_v0  ;;  %v423_v34 = vpop.f32.mrb[37].mxu0 }
 0x16f   :  { %v424_v35 = vadd.f32 %v423_v34, %v3855_v1  ;;  %v425_v36 = vpop.f32.mrb[38].mxu0  ;;  %902 = vmatprep.mubr.bf16.mxu1 %v571_v31 }
 0x170   :  { %v426_v37 = vadd.f32 %v425_v36, %v3852_v0  ;;  %v427_v38 = vpop.f32.mrb[39].mxu0  ;;  %903 = vmatmul.mubr.bf16.gmra.mrb[32].mxu1 %v570_v30  ;;  %v526_v40 = vmax.f32 %v422_v33, 0.0 }
 0x171   :  { %v428_v39 = vadd.f32 %v427_v38, %v3855_v1  ;;  %v527_v42 = vmax.f32 %v424_v35, 0.0 }
 0x172   :  { %v528_v41 = vmax.f32 %v426_v37, 0.0 }
 0x173   :  { %v529_v43 = vmax.f32 %v428_v39, 0.0 }
 0x174   :  { %v572_v44 = vpack.c.bf16 %v528_v41, %v526_v40 }
 0x175   :  { %v573_v45 = vpack.c.bf16 %v529_v43, %v527_v42  ;;  %v431_v46 = vpop.f32.mrb[40].mxu0 }
 0x176   :  { %v432_v47 = vadd.f32 %v431_v46, %v3852_v0  ;;  %v433_v48 = vpop.f32.mrb[41].mxu0 }
 0x177   :  { %v434_v49 = vadd.f32 %v433_v48, %v3855_v1  ;;  %v435_v50 = vpop.f32.mrb[42].mxu0  ;;  %912 = vmatprep.mubr.bf16.mxu1 %v573_v45 }
 0x178   :  { %v436_v51 = vadd.f32 %v435_v50, %v3852_v0  ;;  %v437_v52 = vpop.f32.mrb[43].mxu0  ;;  %913 = vmatmul.mubr.bf16.gmra.mrb[36].mxu1 %v572_v44  ;;  %v530_v54 = vmax.f32 %v432_v47, 0.0 }
 0x179   :  { %v438_v53 = vadd.f32 %v437_v52, %v3855_v1  ;;  %v531_v56 = vmax.f32 %v434_v49, 0.0 }
 0x17a   :  { %v532_v55 = vmax.f32 %v436_v51, 0.0 }
 0x17b   :  { %v533_v57 = vmax.f32 %v438_v53, 0.0 }
 0x17c   :  { %v574_v58 = vpack.c.bf16 %v532_v55, %v530_v54 }
 0x17d   :  { %v575_v60 = vpack.c.bf16 %v533_v57, %v531_v56  ;;  %v441_v62 = vpop.f32.mrb[44].mxu0 }
 0x17e   :  { %v442_v63 = vadd.f32 %v441_v62, %v3852_v0  ;;  %v443_v2 = vpop.f32.mrb[45].mxu0 }
 0x17f   :  { %v444_v3 = vadd.f32 %v443_v2, %v3855_v1  ;;  %v445_v4 = vpop.f32.mrb[46].mxu0  ;;  %922 = vmatprep.mubr.bf16.mxu1 %v575_v60 }
 0x180   :  { %v446_v5 = vadd.f32 %v445_v4, %v3852_v0  ;;  %v447_v6 = vpop.f32.mrb[47].mxu0  ;;  %923 = vmatmul.mubr.bf16.gmra.mrb[40].mxu1 %v574_v58  ;;  %v534_v8 = vmax.f32 %v442_v63, 0.0 }
 0x181   :  { %v448_v7 = vadd.f32 %v447_v6, %v3855_v1  ;;  %v535_v10 = vmax.f32 %v444_v3, 0.0 }
 0x182   :  { %v536_v9 = vmax.f32 %v446_v5, 0.0 }
 0x183   :  { %v537_v11 = vmax.f32 %v448_v7, 0.0 }
 0x184   :  { %v576_v12 = vpack.c.bf16 %v536_v9, %v534_v8 }
 0x185   :  { %v577_v13 = vpack.c.bf16 %v537_v11, %v535_v10  ;;  %v451_v14 = vpop.f32.mrb[48].mxu0 }
 0x186   :  { %v452_v15 = vadd.f32 %v451_v14, %v3852_v0  ;;  %v453_v16 = vpop.f32.mrb[49].mxu0  ;;  %v3439_v14 = vld [vmem:[#allocation6 + $0x10] ss:$8 sps:$4 sm:$0xff]  }
 0x187   :  { %v454_v17 = vadd.f32 %v453_v16, %v3855_v1  ;;  %v455_v18 = vpop.f32.mrb[50].mxu0  ;;  %932 = vmatprep.mubr.bf16.mxu1 %v577_v13  ;;  %v3438_v13 = vld [vmem:[#allocation6 + $0x4] ss:$8 sps:$4 sm:$0xff]  }
 0x188   :  { %v456_v19 = vadd.f32 %v455_v18, %v3852_v0  ;;  %v457_v20 = vpop.f32.mrb[51].mxu0  ;;  %933 = vmatmul.mubr.bf16.gmra.mrb[44].mxu1 %v576_v12  ;;  %v538_v24 = vmax.f32 %v452_v15, 0.0  ;;  %v3436_v12 = vld [vmem:[#allocation6] ss:$8 sps:$4 sm:$0xff]   ;;  %1776 = vmatprep.subr.bf16.mxu1 %v3438_v13  ;;  %v3441_v15 = vld [vmem:[#allocation6 + $0x14] ss:$8 sps:$4 sm:$0xff]  }
 0x189   :  { %v458_v22 = vadd.f32 %v457_v20, %v3855_v1  ;;  %v539_v26 = vmax.f32 %v454_v17, 0.0  ;;  %1777 = vmatpush1.bf16.msra.mxu1 %v3436_v12  ;;  %v3444_v16 = vld [vmem:[#allocation6 + $0x24] ss:$8 sps:$4 sm:$0xff]   ;;  %v3445_v20 = vld [vmem:[#allocation6 + $0x30] ss:$8 sps:$4 sm:$0xff]  }
 0x18a   :  { %v540_v25 = vmax.f32 %v456_v19, 0.0  ;;  %1778 = vmatprep.subr.bf16.mxu1 %v3441_v15  ;;  %v3463_v13 = vld [vmem:[#allocation6 + $0x90] ss:$8 sps:$4 sm:$0xff]  }
 0x18b   :  { %v541_v27 = vmax.f32 %v458_v22, 0.0 }
 0x18c   :  { %v578_v28 = vpack.c.bf16 %v540_v25, %v538_v24 }
 0x18d   :  { %v579_v29 = vpack.c.bf16 %v541_v27, %v539_v26  ;;  %v461_v30 = vpop.f32.mrb[52].mxu0  ;;  %1779 = vmatpush1.bf16.msra.mxu1 %v3439_v14 }
 0x18e   :  { %v462_v31 = vadd.f32 %v461_v30, %v3852_v0  ;;  %v463_v32 = vpop.f32.mrb[53].mxu0  ;;  %1780 = vmatprep.subr.bf16.mxu1 %v3444_v16 }
 0x18f   :  { %v464_v33 = vadd.f32 %v463_v32, %v3855_v1  ;;  %v465_v34 = vpop.f32.mrb[54].mxu0  ;;  %942 = vmatprep.mubr.bf16.mxu1 %v579_v29  ;;  %v3450_v29 = vld [vmem:[#allocation6 + $0x44] ss:$8 sps:$4 sm:$0xff]  }
 0x190   :  { %v466_v35 = vadd.f32 %v465_v34, %v3852_v0  ;;  %v467_v36 = vpop.f32.mrb[55].mxu0  ;;  %943 = vmatmul.mubr.bf16.gmra.mrb[48].mxu1 %v578_v28  ;;  %v542_v38 = vmax.f32 %v462_v31, 0.0  ;;  %v3448_v28 = vld [vmem:[#allocation6 + $0x40] ss:$8 sps:$4 sm:$0xff]   ;;  %v3453_v31 = vld [vmem:[#allocation6 + $0x54] ss:$8 sps:$4 sm:$0xff]  }
 0x191   :  { %v468_v37 = vadd.f32 %v467_v36, %v3855_v1  ;;  %v543_v40 = vmax.f32 %v464_v33, 0.0 }
 0x192   :  { %v544_v39 = vmax.f32 %v466_v35, 0.0 }
 0x193   :  { %v545_v41 = vmax.f32 %v468_v37, 0.0  ;;  %v3451_v37 = vld [vmem:[#allocation6 + $0x50] ss:$8 sps:$4 sm:$0xff]  }
 0x194   :  { %v580_v42 = vpack.c.bf16 %v544_v39, %v542_v38 }
 0x195   :  { %v581_v43 = vpack.c.bf16 %v545_v41, %v543_v40  ;;  %v471_v44 = vpop.f32.mrb[56].mxu0  ;;  %v3456_v40 = vld [vmem:[#allocation6 + $0x64] ss:$8 sps:$4 sm:$0xff]  }
 0x196   :  { %v472_v45 = vadd.f32 %v471_v44, %v3852_v0  ;;  %v473_v46 = vpop.f32.mrb[57].mxu0 }
 0x197   :  { %v474_v47 = vadd.f32 %v473_v46, %v3855_v1  ;;  %v475_v48 = vpop.f32.mrb[58].mxu0  ;;  %952 = vmatprep.mubr.bf16.mxu1 %v581_v43 }
 0x198   :  { %v476_v49 = vadd.f32 %v475_v48, %v3852_v0  ;;  %v477_v50 = vpop.f32.mrb[59].mxu0  ;;  %953 = vmatmul.mubr.bf16.gmra.mrb[52].mxu1 %v580_v42  ;;  %v546_v52 = vmax.f32 %v472_v45, 0.0 }
 0x199   :  { %v478_v51 = vadd.f32 %v477_v50, %v3855_v1  ;;  %v547_v54 = vmax.f32 %v474_v47, 0.0  ;;  %v3454_v47 = vld [vmem:[#allocation6 + $0x60] ss:$8 sps:$4 sm:$0xff]  }
 0x19a   :  { %v548_v53 = vmax.f32 %v476_v49, 0.0  ;;  %v3459_v49 = vld [vmem:[#allocation6 + $0x74] ss:$8 sps:$4 sm:$0xff]  }
 0x19b   :  { %v549_v55 = vmax.f32 %v478_v51, 0.0 }
 0x19c   :  { %v582_v56 = vpack.c.bf16 %v548_v53, %v546_v52 }
 0x19d   :  { %v583_v57 = vpack.c.bf16 %v549_v55, %v547_v54  ;;  %v481_v58 = vpop.f32.mrb[60].mxu0  ;;  %v3457_v55 = vld [vmem:[#allocation6 + $0x70] ss:$8 sps:$4 sm:$0xff]  }
 0x19e   :  { %v482_v60 = vadd.f32 %v481_v58, %v3852_v0  ;;  %v483_v62 = vpop.f32.mrb[61].mxu0  ;;  %v3462_v58 = vld [vmem:[#allocation6 + $0x84] ss:$8 sps:$4 sm:$0xff]  }
 0x19f   :  { %v484_v63 = vadd.f32 %v483_v62, %v3855_v1  ;;  %v485_v2 = vpop.f32.mrb[62].mxu0  ;;  %962 = vmatprep.mubr.bf16.mxu1 %v583_v57 }
 0x1a0   :  { %v486_v3 = vadd.f32 %v485_v2, %v3852_v0  ;;  %v487_v4 = vpop.f32.mrb[63].mxu0  ;;  %963 = vmatmul.mubr.bf16.gmra.mrb[56].mxu1 %v582_v56  ;;  %v550_v6 = vmax.f32 %v482_v60, 0.0  ;;  %v618_v0 = vld [vmem:[%s4314_s4] sm:$0x3] }
 0x1a1   :  { %v488_v5 = vadd.f32 %v487_v4, %v3855_v1  ;;  %v551_v8 = vmax.f32 %v484_v63, 0.0  ;;  %v3442_v1 = vld [vmem:[#allocation6 + $0x20] ss:$8 sps:$4 sm:$0xff]   ;;  %v3925_v17 = vrot.slane %v618_v0, %v3844_v59  ;;  %v3928_v18 = vrot.slane %v618_v0, %v3849_v61  ;;  %v3468_v0 = vld [vmem:[#allocation6 + $0xa4] ss:$8 sps:$4 sm:$0xff]  }
 0x1a2   :  { %v552_v7 = vmax.f32 %v486_v3, 0.0  ;;  %1781 = vmatpush1.bf16.msra.mxu1 %v3442_v1 }
 0x1a3   :  { %v553_v9 = vmax.f32 %v488_v5, 0.0  ;;  %1782 = vmatprep.subr.bf16.mxu1 %v3447_v21  ;;  %v3460_v5 = vld [vmem:[#allocation6 + $0x80] ss:$8 sps:$4 sm:$0xff]  }
 0x1a4   :  { %v584_v10 = vpack.c.bf16 %v552_v7, %v550_v6  ;;  %v3465_v7 = vld [vmem:[#allocation6 + $0x94] ss:$8 sps:$4 sm:$0xff]  }
 0x1a5   :  { %v585_v11 = vpack.c.bf16 %v553_v9, %v551_v8 }
 0x1a6   :  { %1783 = vmatpush1.bf16.msra.mxu1 %v3445_v20 }
 0x1a7   :  { %972 = vmatprep.mubr.bf16.mxu1 %v585_v11  ;;  %1784 = vmatprep.subr.bf16.mxu1 %v3450_v29 }
 0x1a8   :  { %973 = vmatmul.mubr.bf16.gmra.mrb[60].mxu1 %v584_v10 }
 0x1aa   :  { %1785 = vmatpush1.bf16.msra.mxu1 %v3448_v28 }
 0x1ab   :  { %1786 = vmatprep.subr.bf16.mxu1 %v3453_v31  ;;  %v3469_v31 = vld [vmem:[#allocation6 + $0xb0] ss:$8 sps:$4 sm:$0xff]  }
 0x1ae   :  { %1787 = vmatpush1.bf16.msra.mxu1 %v3451_v37 }
 0x1af   :  { %1788 = vmatprep.subr.bf16.mxu1 %v3456_v40 }
 0x1b2   :  { %1789 = vmatpush1.bf16.msra.mxu1 %v3454_v47 }
 0x1b3   :  { %1790 = vmatprep.subr.bf16.mxu1 %v3459_v49  ;;  %v3475_v49 = vld [vmem:[#allocation6 + $0xd0] ss:$8 sps:$4 sm:$0xff]  }
 0x1b6   :  { %1791 = vmatpush1.bf16.msra.mxu1 %v3457_v55 }
 0x1b7   :  { %1792 = vmatprep.subr.bf16.mxu1 %v3462_v58 }
 0x1ba   :  { %1793 = vmatpush1.bf16.msra.mxu1 %v3460_v5 }
 0x1bb   :  { %1794 = vmatprep.subr.bf16.mxu1 %v3465_v7 }
 0x1be   :  { %1795 = vmatpush1.bf16.msra.mxu1 %v3463_v13 }
 0x1bf   :  { %1796 = vmatprep.subr.bf16.mxu1 %v3468_v0 }
 0x203   :  { %v824_v19 = vpop.f32.mrb[0].mxu1 }
 0x204   :  { %v825_v22 = vadd.f32 %v824_v19, %v3925_v17  ;;  %v826_v23 = vpop.f32.mrb[1].mxu1 }
 0x205   :  { %v827_v24 = vadd.f32 %v826_v23, %v3928_v18  ;;  %v828_v25 = vpop.f32.mrb[2].mxu1  ;;  %v3466_v23 = vld [vmem:[#allocation6 + $0xa0] ss:$8 sps:$4 sm:$0xff]  }
 0x206   :  { %v829_v26 = vadd.f32 %v828_v25, %v3925_v17  ;;  %v830_v27 = vpop.f32.mrb[3].mxu1  ;;  %v983_v32 = vmax.f32 %v825_v22, 0.0  ;;  %v3471_v25 = vld [vmem:[#allocation6 + $0xb4] ss:$8 sps:$4 sm:$0xff]   ;;  %1797 = vmatpush1.bf16.msra.mxu1 %v3466_v23 }
 0x207   :  { %v831_v30 = vadd.f32 %v830_v27, %v3928_v18  ;;  %v984_v34 = vmax.f32 %v827_v24, 0.0  ;;  %1798 = vmatprep.subr.bf16.mxu1 %v3471_v25 }
 0x208   :  { %v985_v33 = vmax.f32 %v829_v26, 0.0 }
 0x209   :  { %v986_v35 = vmax.f32 %v831_v30, 0.0 }
 0x20a   :  { %v1047_v36 = vpack.c.bf16 %v985_v33, %v983_v32  ;;  %1799 = vmatpush1.bf16.msra.mxu1 %v3469_v31 }
 0x20b   :  { %v1048_v38 = vpack.c.bf16 %v986_v35, %v984_v34  ;;  %v834_v39 = vpop.f32.mrb[4].mxu1  ;;  %v3474_v34 = vld [vmem:[#allocation6 + $0xc4] ss:$8 sps:$4 sm:$0xff]  }
 0x20c   :  { %v835_v41 = vadd.f32 %v834_v39, %v3925_v17  ;;  %v836_v42 = vpop.f32.mrb[5].mxu1  ;;  %1800 = vmatprep.subr.bf16.mxu1 %v3474_v34 }
 0x20d   :  { %v837_v43 = vadd.f32 %v836_v42, %v3928_v18  ;;  %v838_v44 = vpop.f32.mrb[6].mxu1  ;;  %1315 = vmatprep.mubr.bf16.mxu0 %v1048_v38 }
 0x20e   :  { %v839_v45 = vadd.f32 %v838_v44, %v3925_v17  ;;  %v840_v46 = vpop.f32.mrb[7].mxu1  ;;  %1316 = vmatmul.mubr.bf16.vlgmr.msra.gmra.mrb[64].mxu0 %v1047_v36  ;;  %v987_v50 = vmax.f32 %v835_v41, 0.0  ;;  %v3472_v41 = vld [vmem:[#allocation6 + $0xc0] ss:$8 sps:$4 sm:$0xff]  }
 0x20f   :  { %v841_v48 = vadd.f32 %v840_v46, %v3928_v18  ;;  %v988_v52 = vmax.f32 %v837_v43, 0.0  ;;  %v3477_v43 = vld [vmem:[#allocation6 + $0xd4] ss:$8 sps:$4 sm:$0xff]   ;;  %1801 = vmatpush1.bf16.msra.mxu1 %v3472_v41 }
 0x210   :  { %v989_v51 = vmax.f32 %v839_v45, 0.0  ;;  %1802 = vmatprep.subr.bf16.mxu1 %v3477_v43 }
 0x211   :  { %v990_v53 = vmax.f32 %v841_v48, 0.0 }
 0x212   :  { %v1049_v54 = vpack.c.bf16 %v989_v51, %v987_v50 }
 0x213   :  { %v1050_v56 = vpack.c.bf16 %v990_v53, %v988_v52  ;;  %v844_v57 = vpop.f32.mrb[8].mxu1  ;;  %v3480_v52 = vld [vmem:[#allocation6 + $0xe4] ss:$8 sps:$4 sm:$0xff]   ;;  %1803 = vmatpush1.bf16.msra.mxu1 %v3475_v49 }
 0x214   :  { %v845_v60 = vadd.f32 %v844_v57, %v3925_v17  ;;  %v846_v62 = vpop.f32.mrb[9].mxu1  ;;  %1804 = vmatprep.subr.bf16.mxu1 %v3480_v52 }
 0x215   :  { %v847_v63 = vadd.f32 %v846_v62, %v3928_v18  ;;  %v848_v2 = vpop.f32.mrb[10].mxu1  ;;  %1325 = vmatprep.mubr.bf16.mxu0 %v1050_v56 }
 0x216   :  { %v849_v3 = vadd.f32 %v848_v2, %v3925_v17  ;;  %v850_v4 = vpop.f32.mrb[11].mxu1  ;;  %1326 = vmatmul.mubr.bf16.gmra.mrb[68].mxu0 %v1049_v54  ;;  %v991_v8 = vmax.f32 %v845_v60, 0.0  ;;  %v3478_v60 = vld [vmem:[#allocation6 + $0xe0] ss:$8 sps:$4 sm:$0xff]  }
 0x217   :  { %v851_v6 = vadd.f32 %v850_v4, %v3928_v18  ;;  %v992_v10 = vmax.f32 %v847_v63, 0.0  ;;  %1805 = vmatpush1.bf16.msra.mxu1 %v3478_v60 }
 0x218   :  { %v993_v9 = vmax.f32 %v849_v3, 0.0 }
 0x219   :  { %v994_v11 = vmax.f32 %v851_v6, 0.0 }
 0x21a   :  { %v1051_v12 = vpack.c.bf16 %v993_v9, %v991_v8 }
 0x21b   :  { %v1052_v14 = vpack.c.bf16 %v994_v11, %v992_v10  ;;  %v854_v15 = vpop.f32.mrb[12].mxu1 }
 0x21c   :  { %v855_v1 = vadd.f32 %v854_v15, %v3925_v17  ;;  %v856_v16 = vpop.f32.mrb[13].mxu1 }
 0x21d   :  { %v857_v19 = vadd.f32 %v856_v16, %v3928_v18  ;;  %v858_v20 = vpop.f32.mrb[14].mxu1  ;;  %1335 = vmatprep.mubr.bf16.mxu0 %v1052_v14 }
 0x21e   :  { %v859_v21 = vadd.f32 %v858_v20, %v3925_v17  ;;  %v860_v22 = vpop.f32.mrb[15].mxu1  ;;  %1336 = vmatmul.mubr.bf16.gmra.mrb[72].mxu0 %v1051_v12  ;;  %v995_v26 = vmax.f32 %v855_v1, 0.0 }
 0x21f   :  { %v861_v24 = vadd.f32 %v860_v22, %v3928_v18  ;;  %v996_v28 = vmax.f32 %v857_v19, 0.0 }
 0x220   :  { %v997_v27 = vmax.f32 %v859_v21, 0.0 }
 0x221   :  { %v998_v29 = vmax.f32 %v861_v24, 0.0 }
 0x222   :  { %v1053_v30 = vpack.c.bf16 %v997_v27, %v995_v26 }
 0x223   :  { %v1054_v32 = vpack.c.bf16 %v998_v29, %v996_v28  ;;  %v864_v33 = vpop.f32.mrb[16].mxu1 }
 0x224   :  { %v865_v35 = vadd.f32 %v864_v33, %v3925_v17  ;;  %v866_v36 = vpop.f32.mrb[17].mxu1 }
 0x225   :  { %v867_v37 = vadd.f32 %v866_v36, %v3928_v18  ;;  %v868_v38 = vpop.f32.mrb[18].mxu1  ;;  %1345 = vmatprep.mubr.bf16.mxu0 %v1054_v32 }
 0x226   :  { %v869_v39 = vadd.f32 %v868_v38, %v3925_v17  ;;  %v870_v40 = vpop.f32.mrb[19].mxu1  ;;  %1346 = vmatmul.mubr.bf16.gmra.mrb[76].mxu0 %v1053_v30  ;;  %v999_v44 = vmax.f32 %v865_v35, 0.0 }
 0x227   :  { %v871_v42 = vadd.f32 %v870_v40, %v3928_v18  ;;  %v1000_v46 = vmax.f32 %v867_v37, 0.0 }
 0x228   :  { %v1001_v45 = vmax.f32 %v869_v39, 0.0 }
 0x229   :  { %v1002_v47 = vmax.f32 %v871_v42, 0.0 }
 0x22a   :  { %v1055_v48 = vpack.c.bf16 %v1001_v45, %v999_v44 }
 0x22b   :  { %v1056_v50 = vpack.c.bf16 %v1002_v47, %v1000_v46  ;;  %v874_v51 = vpop.f32.mrb[20].mxu1 }
 0x22c   :  { %v875_v53 = vadd.f32 %v874_v51, %v3925_v17  ;;  %v876_v54 = vpop.f32.mrb[21].mxu1 }
 0x22d   :  { %v877_v55 = vadd.f32 %v876_v54, %v3928_v18  ;;  %v878_v56 = vpop.f32.mrb[22].mxu1  ;;  %1355 = vmatprep.mubr.bf16.mxu0 %v1056_v50 }
 0x22e   :  { %v879_v57 = vadd.f32 %v878_v56, %v3925_v17  ;;  %v880_v58 = vpop.f32.mrb[23].mxu1  ;;  %1356 = vmatmul.mubr.bf16.gmra.mrb[80].mxu0 %v1055_v48  ;;  %v1003_v63 = vmax.f32 %v875_v53, 0.0 }
 0x22f   :  { %v881_v62 = vadd.f32 %v880_v58, %v3928_v18  ;;  %v1004_v3 = vmax.f32 %v877_v55, 0.0 }
 0x230   :  { %v1005_v2 = vmax.f32 %v879_v57, 0.0 }
 0x231   :  { %v1006_v4 = vmax.f32 %v881_v62, 0.0 }
 0x232   :  { %v1057_v5 = vpack.c.bf16 %v1005_v2, %v1003_v63 }
 0x233   :  { %v1058_v6 = vpack.c.bf16 %v1006_v4, %v1004_v3  ;;  %v884_v7 = vpop.f32.mrb[24].mxu1 }
 0x234   :  { %v885_v8 = vadd.f32 %v884_v7, %v3925_v17  ;;  %v886_v9 = vpop.f32.mrb[25].mxu1 }
 0x235   :  { %v887_v10 = vadd.f32 %v886_v9, %v3928_v18  ;;  %v888_v11 = vpop.f32.mrb[26].mxu1  ;;  %1365 = vmatprep.mubr.bf16.mxu0 %v1058_v6 }
 0x236   :  { %v889_v12 = vadd.f32 %v888_v11, %v3925_v17  ;;  %v890_v13 = vpop.f32.mrb[27].mxu1  ;;  %1366 = vmatmul.mubr.bf16.gmra.mrb[84].mxu0 %v1057_v5  ;;  %v1007_v15 = vmax.f32 %v885_v8, 0.0 }
 0x237   :  { %v891_v14 = vadd.f32 %v890_v13, %v3928_v18  ;;  %v1008_v1 = vmax.f32 %v887_v10, 0.0 }
 0x238   :  { %v1009_v0 = vmax.f32 %v889_v12, 0.0 }
 0x239   :  { %v1010_v16 = vmax.f32 %v891_v14, 0.0 }
 0x23a   :  { %v1059_v19 = vpack.c.bf16 %v1009_v0, %v1007_v15 }
 0x23b   :  { %v1060_v20 = vpack.c.bf16 %v1010_v16, %v1008_v1  ;;  %v894_v21 = vpop.f32.mrb[28].mxu1 }
 0x23c   :  { %v895_v22 = vadd.f32 %v894_v21, %v3925_v17  ;;  %v896_v23 = vpop.f32.mrb[29].mxu1 }
 0x23d   :  { %v897_v24 = vadd.f32 %v896_v23, %v3928_v18  ;;  %v898_v25 = vpop.f32.mrb[30].mxu1  ;;  %1375 = vmatprep.mubr.bf16.mxu0 %v1060_v20 }
 0x23e   :  { %v899_v26 = vadd.f32 %v898_v25, %v3925_v17  ;;  %v900_v27 = vpop.f32.mrb[31].mxu1  ;;  %1376 = vmatmul.mubr.bf16.gmra.mrb[88].mxu0 %v1059_v19  ;;  %v1011_v29 = vmax.f32 %v895_v22, 0.0 }
 0x23f   :  { %v901_v28 = vadd.f32 %v900_v27, %v3928_v18  ;;  %v1012_v31 = vmax.f32 %v897_v24, 0.0 }
 0x240   :  { %v1013_v30 = vmax.f32 %v899_v26, 0.0 }
 0x241   :  { %v1014_v32 = vmax.f32 %v901_v28, 0.0 }
 0x242   :  { %v1061_v33 = vpack.c.bf16 %v1013_v30, %v1011_v29 }
 0x243   :  { %v1062_v34 = vpack.c.bf16 %v1014_v32, %v1012_v31  ;;  %v904_v35 = vpop.f32.mrb[32].mxu1 }
 0x244   :  { %v905_v36 = vadd.f32 %v904_v35, %v3925_v17  ;;  %v906_v37 = vpop.f32.mrb[33].mxu1 }
 0x245   :  { %v907_v38 = vadd.f32 %v906_v37, %v3928_v18  ;;  %v908_v39 = vpop.f32.mrb[34].mxu1  ;;  %1385 = vmatprep.mubr.bf16.mxu0 %v1062_v34 }
 0x246   :  { %v909_v40 = vadd.f32 %v908_v39, %v3925_v17  ;;  %v910_v41 = vpop.f32.mrb[35].mxu1  ;;  %1386 = vmatmul.mubr.bf16.gmra.mrb[92].mxu0 %v1061_v33  ;;  %v1015_v43 = vmax.f32 %v905_v36, 0.0 }
 0x247   :  { %v911_v42 = vadd.f32 %v910_v41, %v3928_v18  ;;  %v1016_v45 = vmax.f32 %v907_v38, 0.0  ;;  %v3483_v38 = vld [vmem:[#allocation6 + $0xf4] ss:$8 sps:$4 sm:$0xff]  }
 0x248   :  { %v1017_v44 = vmax.f32 %v909_v40, 0.0  ;;  %v3481_v40 = vld [vmem:[#allocation6 + $0xf0] ss:$8 sps:$4 sm:$0xff]   ;;  %1806 = vmatprep.subr.bf16.mxu1 %v3483_v38 }
 0x249   :  { %v1018_v46 = vmax.f32 %v911_v42, 0.0  ;;  %1807 = vmatpush1.bf16.msra.mxu1 %v3481_v40 }
 0x24a   :  { %v1063_v47 = vpack.c.bf16 %v1017_v44, %v1015_v43 }
 0x24b   :  { %v1064_v48 = vpack.c.bf16 %v1018_v46, %v1016_v45  ;;  %v914_v49 = vpop.f32.mrb[36].mxu1 }
 0x24c   :  { %v915_v50 = vadd.f32 %v914_v49, %v3925_v17  ;;  %v916_v51 = vpop.f32.mrb[37].mxu1 }
 0x24d   :  { %v917_v52 = vadd.f32 %v916_v51, %v3928_v18  ;;  %v918_v53 = vpop.f32.mrb[38].mxu1  ;;  %1395 = vmatprep.mubr.bf16.mxu0 %v1064_v48 }
 0x24e   :  { %v919_v54 = vadd.f32 %v918_v53, %v3925_v17  ;;  %v920_v55 = vpop.f32.mrb[39].mxu1  ;;  %1396 = vmatmul.mubr.bf16.gmra.mrb[96].mxu0 %v1063_v47  ;;  %v1019_v57 = vmax.f32 %v915_v50, 0.0 }
 0x24f   :  { %v921_v56 = vadd.f32 %v920_v55, %v3928_v18  ;;  %v1020_v60 = vmax.f32 %v917_v52, 0.0 }
 0x250   :  { %v1021_v58 = vmax.f32 %v919_v54, 0.0 }
 0x251   :  { %v1022_v62 = vmax.f32 %v921_v56, 0.0 }
 0x252   :  { %v1065_v63 = vpack.c.bf16 %v1021_v58, %v1019_v57 }
 0x253   :  { %v1066_v2 = vpack.c.bf16 %v1022_v62, %v1020_v60  ;;  %v924_v3 = vpop.f32.mrb[40].mxu1 }
 0x254   :  { %v925_v4 = vadd.f32 %v924_v3, %v3925_v17  ;;  %v926_v5 = vpop.f32.mrb[41].mxu1 }
 0x255   :  { %v927_v6 = vadd.f32 %v926_v5, %v3928_v18  ;;  %v928_v7 = vpop.f32.mrb[42].mxu1  ;;  %1405 = vmatprep.mubr.bf16.mxu0 %v1066_v2 }
 0x256   :  { %v929_v8 = vadd.f32 %v928_v7, %v3925_v17  ;;  %v930_v9 = vpop.f32.mrb[43].mxu1  ;;  %1406 = vmatmul.mubr.bf16.gmra.mrb[100].mxu0 %v1065_v63  ;;  %v1023_v11 = vmax.f32 %v925_v4, 0.0 }
 0x257   :  { %v931_v10 = vadd.f32 %v930_v9, %v3928_v18  ;;  %v1024_v13 = vmax.f32 %v927_v6, 0.0 }
 0x258   :  { %v1025_v12 = vmax.f32 %v929_v8, 0.0 }
 0x259   :  { %v1026_v14 = vmax.f32 %v931_v10, 0.0 }
 0x25a   :  { %v1067_v15 = vpack.c.bf16 %v1025_v12, %v1023_v11 }
 0x25b   :  { %v1068_v0 = vpack.c.bf16 %v1026_v14, %v1024_v13  ;;  %v934_v1 = vpop.f32.mrb[44].mxu1 }
 0x25c   :  { %v935_v16 = vadd.f32 %v934_v1, %v3925_v17  ;;  %v936_v19 = vpop.f32.mrb[45].mxu1 }
 0x25d   :  { %v937_v20 = vadd.f32 %v936_v19, %v3928_v18  ;;  %v938_v21 = vpop.f32.mrb[46].mxu1  ;;  %1415 = vmatprep.mubr.bf16.mxu0 %v1068_v0 }
 0x25e   :  { %v939_v22 = vadd.f32 %v938_v21, %v3925_v17  ;;  %v940_v23 = vpop.f32.mrb[47].mxu1  ;;  %1416 = vmatmul.mubr.bf16.gmra.mrb[104].mxu0 %v1067_v15  ;;  %v1027_v25 = vmax.f32 %v935_v16, 0.0 }
 0x25f   :  { %v941_v24 = vadd.f32 %v940_v23, %v3928_v18  ;;  %v1028_v27 = vmax.f32 %v937_v20, 0.0 }
 0x260   :  { %v1029_v26 = vmax.f32 %v939_v22, 0.0 }
 0x261   :  { %v1030_v28 = vmax.f32 %v941_v24, 0.0 }
 0x262   :  { %v1069_v29 = vpack.c.bf16 %v1029_v26, %v1027_v25 }
 0x263   :  { %v1070_v30 = vpack.c.bf16 %v1030_v28, %v1028_v27  ;;  %v944_v31 = vpop.f32.mrb[48].mxu1 }
 0x264   :  { %v945_v32 = vadd.f32 %v944_v31, %v3925_v17  ;;  %v946_v33 = vpop.f32.mrb[49].mxu1  ;;  %v3487_v31 = vld [vmem:[%s4319_s9 + $0x8] sm:$0xff]  }
 0x265   :  { %v947_v34 = vadd.f32 %v946_v33, %v3928_v18  ;;  %v948_v35 = vpop.f32.mrb[50].mxu1  ;;  %1425 = vmatprep.mubr.bf16.mxu0 %v1070_v30  ;;  %v3486_v30 = vld [vmem:[%s4319_s9 + $0x48] sm:$0xff]  }
 0x266   :  { %v949_v36 = vadd.f32 %v948_v35, %v3925_v17  ;;  %v950_v37 = vpop.f32.mrb[51].mxu1  ;;  %1426 = vmatmul.mubr.bf16.gmra.mrb[108].mxu0 %v1069_v29  ;;  %v1031_v41 = vmax.f32 %v945_v32, 0.0  ;;  %v3484_v29 = vld [vmem:[%s4319_s9 + $0x40] sm:$0xff]  }
 0x267   :  { %v951_v39 = vadd.f32 %v950_v37, %v3928_v18  ;;  %v1032_v43 = vmax.f32 %v947_v34, 0.0  ;;  %3125 = vmatprep.subr.bf16.mxu0 %v3484_v29 }
 0x268   :  { %v1033_v42 = vmax.f32 %v949_v36, 0.0 }
 0x269   :  { %v1034_v44 = vmax.f32 %v951_v39, 0.0 }
 0x26a   :  { %v1071_v45 = vpack.c.bf16 %v1033_v42, %v1031_v41  ;;  %v3488_v41 = vld [vmem:[%s4319_s9 + $0x50] sm:$0xff]  }
 0x26b   :  { %v1072_v46 = vpack.c.bf16 %v1034_v44, %v1032_v43  ;;  %v954_v47 = vpop.f32.mrb[52].mxu1  ;;  %v3489_v42 = vld [vmem:[%s4319_s9 + $0x10] sm:$0xff]   ;;  %v3490_v43 = vld [vmem:[%s4319_s9 + $0x58] sm:$0xff]  }
 0x26c   :  { %v955_v48 = vadd.f32 %v954_v47, %v3925_v17  ;;  %v956_v49 = vpop.f32.mrb[53].mxu1 }
 0x26d   :  { %v957_v50 = vadd.f32 %v956_v49, %v3928_v18  ;;  %v958_v51 = vpop.f32.mrb[54].mxu1  ;;  %1435 = vmatprep.mubr.bf16.mxu0 %v1072_v46  ;;  %v3491_v49 = vld [vmem:[%s4319_s9 + $0x18] sm:$0xff]  }
 0x26e   :  { %v959_v52 = vadd.f32 %v958_v51, %v3925_v17  ;;  %v960_v53 = vpop.f32.mrb[55].mxu1  ;;  %1436 = vmatmul.mubr.bf16.gmra.mrb[112].mxu0 %v1071_v45  ;;  %v1035_v55 = vmax.f32 %v955_v48, 0.0  ;;  %v3492_v51 = vld [vmem:[%s4319_s9 + $0x60] sm:$0xff]  }
 0x26f   :  { %v961_v54 = vadd.f32 %v960_v53, %v3928_v18  ;;  %v1036_v57 = vmax.f32 %v957_v50, 0.0 }
 0x270   :  { %v1037_v56 = vmax.f32 %v959_v52, 0.0 }
 0x271   :  { %v1038_v58 = vmax.f32 %v961_v54, 0.0 }
 0x272   :  { %v1073_v60 = vpack.c.bf16 %v1037_v56, %v1035_v55 }
 0x273   :  { %v1074_v62 = vpack.c.bf16 %v1038_v58, %v1036_v57  ;;  %v964_v63 = vpop.f32.mrb[56].mxu1  ;;  %v3493_v58 = vld [vmem:[%s4319_s9 + $0x20] sm:$0xff]  }
 0x274   :  { %v965_v2 = vadd.f32 %v964_v63, %v3925_v17  ;;  %v966_v3 = vpop.f32.mrb[57].mxu1  ;;  %v3494_v63 = vld [vmem:[%s4319_s9 + $0x68] sm:$0xff]  }
 0x275   :  { %v967_v4 = vadd.f32 %v966_v3, %v3928_v18  ;;  %v968_v5 = vpop.f32.mrb[58].mxu1  ;;  %1445 = vmatprep.mubr.bf16.mxu0 %v1074_v62 }
 0x276   :  { %v969_v6 = vadd.f32 %v968_v5, %v3925_v17  ;;  %v970_v7 = vpop.f32.mrb[59].mxu1  ;;  %1446 = vmatmul.mubr.bf16.gmra.mrb[116].mxu0 %v1073_v60  ;;  %v1039_v9 = vmax.f32 %v965_v2, 0.0 }
 0x277   :  { %v971_v8 = vadd.f32 %v970_v7, %v3928_v18  ;;  %v1040_v11 = vmax.f32 %v967_v4, 0.0  ;;  %v3495_v7 = vld [vmem:[%s4319_s9 + $0x28] sm:$0xff]  }
 0x278   :  { %v1041_v10 = vmax.f32 %v969_v6, 0.0 }
 0x279   :  { %v1042_v12 = vmax.f32 %v971_v8, 0.0 }
 0x27a   :  { %v1075_v13 = vpack.c.bf16 %v1041_v10, %v1039_v9  ;;  %v3496_v9 = vld [vmem:[%s4319_s9 + $0x70] sm:$0xff]  }
 0x27b   :  { %v1076_v14 = vpack.c.bf16 %v1042_v12, %v1040_v11  ;;  %v974_v15 = vpop.f32.mrb[60].mxu1 }
 0x27c   :  { %v975_v0 = vadd.f32 %v974_v15, %v3925_v17  ;;  %v976_v1 = vpop.f32.mrb[61].mxu1 }
 0x27d   :  { %v977_v16 = vadd.f32 %v976_v1, %v3928_v18  ;;  %v978_v19 = vpop.f32.mrb[62].mxu1  ;;  %1455 = vmatprep.mubr.bf16.mxu0 %v1076_v14 }
 0x27e   :  { %v979_v20 = vadd.f32 %v978_v19, %v3925_v17  ;;  %v980_v21 = vpop.f32.mrb[63].mxu1  ;;  %1456 = vmatmul.mubr.bf16.gmra.mrb[120].mxu0 %v1075_v13  ;;  %v1043_v23 = vmax.f32 %v975_v0, 0.0  ;;  %v3485_v17 = vld [vmem:[%s4319_s9] sm:$0xff]   ;;  %v3497_v0 = vld [vmem:[%s4319_s9 + $0x30] sm:$0xff]   ;;  %v3498_v19 = vld [vmem:[%s4319_s9 + $0x78] sm:$0xff]  }
 0x27f   :  { %v981_v22 = vadd.f32 %v980_v21, %v3928_v18  ;;  %v1044_v25 = vmax.f32 %v977_v16, 0.0  ;;  %3126 = vmatpush3.bf16.msra.mxu0 %v3485_v17  ;;  %v1111_v18 = vld [vmem:[%s4316_s6] sm:$0x3] }
 0x280   :  { %v1045_v24 = vmax.f32 %v979_v20, 0.0  ;;  %v4010_v32 = vrot.slane %v1111_v18, %v3844_v59  ;;  %3127 = vmatprep.subr.bf16.mxu0 %v3486_v30  ;;  %v4013_v33 = vrot.slane %v1111_v18, %v3849_v61 }
 0x281   :  { %v1046_v26 = vmax.f32 %v981_v22, 0.0 }
 0x282   :  { %v1077_v27 = vpack.c.bf16 %v1045_v24, %v1043_v23 }
 0x283   :  { %v1078_v28 = vpack.c.bf16 %v1046_v26, %v1044_v25  ;;  %3128 = vmatpush3.bf16.msra.mxu0 %v3487_v31  ;;  %v3499_v25 = vld [vmem:[%s4319_s9 + $0x38] sm:$0xff]  }
 0x284   :  { %3129 = vmatprep.subr.bf16.mxu0 %v3488_v41 }
 0x285   :  { %1465 = vmatprep.mubr.bf16.mxu0 %v1078_v28 }
 0x286   :  { %1466 = vmatmul.mubr.bf16.gmra.mrb[124].mxu0 %v1077_v27 }
 0x287   :  { %3130 = vmatpush3.bf16.msra.mxu0 %v3489_v42 }
 0x288   :  { %3131 = vmatprep.subr.bf16.mxu0 %v3490_v43 }
 0x28b   :  { %3132 = vmatpush3.bf16.msra.mxu0 %v3491_v49 }
 0x28c   :  { %3133 = vmatprep.subr.bf16.mxu0 %v3492_v51 }
 0x28f   :  { %3134 = vmatpush3.bf16.msra.mxu0 %v3493_v58 }
 0x290   :  { %3135 = vmatprep.subr.bf16.mxu0 %v3494_v63 }
 0x293   :  { %3136 = vmatpush3.bf16.msra.mxu0 %v3495_v7 }
 0x294   :  { %3137 = vmatprep.subr.bf16.mxu0 %v3496_v9 }
 0x297   :  { %3138 = vmatpush3.bf16.msra.mxu0 %v3497_v0 }
 0x298   :  { %3139 = vmatprep.subr.bf16.mxu0 %v3498_v19 }
 0x29b   :  { %3140 = vmatpush3.bf16.msra.mxu0 %v3499_v25 }
 0x2e1   :  { %v1317_v34 = vpop.f32.mrb[64].mxu0 }
 0x2e2   :  { %v1318_v35 = vadd.f32 %v1317_v34, %v4010_v32  ;;  %v1319_v36 = vpop.f32.mrb[65].mxu0 }
 0x2e3   :  { %v1320_v37 = vadd.f32 %v1319_v36, %v4013_v33  ;;  %v1321_v38 = vpop.f32.mrb[66].mxu0 }
 0x2e4   :  { %v1322_v39 = vadd.f32 %v1321_v38, %v4010_v32  ;;  %v1323_v40 = vpop.f32.mrb[67].mxu0  ;;  %v1476_v45 = vmax.f32 %v1318_v35, 0.0 }
 0x2e5   :  { %v1324_v44 = vadd.f32 %v1323_v40, %v4013_v33  ;;  %v1477_v47 = vmax.f32 %v1320_v37, 0.0 }
 0x2e6   :  { %v1478_v46 = vmax.f32 %v1322_v39, 0.0 }
 0x2e7   :  { %v1479_v48 = vmax.f32 %v1324_v44, 0.0 }
 0x2e8   :  { %v1540_v50 = vpack.c.bf16 %v1478_v46, %v1476_v45 }
 0x2e9   :  { %v1541_v52 = vpack.c.bf16 %v1479_v48, %v1477_v47  ;;  %v1327_v53 = vpop.f32.mrb[68].mxu0 }
 0x2ea   :  { %v1328_v54 = vadd.f32 %v1327_v53, %v4010_v32  ;;  %v1329_v55 = vpop.f32.mrb[69].mxu0 }
 0x2eb   :  { %v1330_v56 = vadd.f32 %v1329_v55, %v4013_v33  ;;  %v1331_v57 = vpop.f32.mrb[70].mxu0  ;;  %1808 = vmatprep.mubr.bf16.mxu1 %v1541_v52 }
 0x2ec   :  { %v1332_v60 = vadd.f32 %v1331_v57, %v4010_v32  ;;  %v1333_v62 = vpop.f32.mrb[71].mxu0  ;;  %1809 = vmatmul.mubr.bf16.vlgmr.msra.gmra.mrb[64].mxu1 %v1540_v50  ;;  %v1480_v3 = vmax.f32 %v1328_v54, 0.0 }
 0x2ed   :  { %v1334_v2 = vadd.f32 %v1333_v62, %v4013_v33  ;;  %v1481_v5 = vmax.f32 %v1330_v56, 0.0 }
 0x2ee   :  { %v1482_v4 = vmax.f32 %v1332_v60, 0.0 }
 0x2ef   :  { %v1483_v6 = vmax.f32 %v1334_v2, 0.0 }
 0x2f0   :  { %v1542_v8 = vpack.c.bf16 %v1482_v4, %v1480_v3 }
 0x2f1   :  { %v1543_v10 = vpack.c.bf16 %v1483_v6, %v1481_v5  ;;  %v1337_v11 = vpop.f32.mrb[72].mxu0 }
 0x2f2   :  { %v1338_v12 = vadd.f32 %v1337_v11, %v4010_v32  ;;  %v1339_v13 = vpop.f32.mrb[73].mxu0 }
 0x2f3   :  { %v1340_v14 = vadd.f32 %v1339_v13, %v4013_v33  ;;  %v1341_v15 = vpop.f32.mrb[74].mxu0  ;;  %1818 = vmatprep.mubr.bf16.mxu1 %v1543_v10 }
 0x2f4   :  { %v1342_v1 = vadd.f32 %v1341_v15, %v4010_v32  ;;  %v1343_v16 = vpop.f32.mrb[75].mxu0  ;;  %1819 = vmatmul.mubr.bf16.gmra.mrb[68].mxu1 %v1542_v8  ;;  %v1484_v21 = vmax.f32 %v1338_v12, 0.0 }
 0x2f5   :  { %v1344_v20 = vadd.f32 %v1343_v16, %v4013_v33  ;;  %v1485_v23 = vmax.f32 %v1340_v14, 0.0 }
 0x2f6   :  { %v1486_v22 = vmax.f32 %v1342_v1, 0.0 }
 0x2f7   :  { %v1487_v24 = vmax.f32 %v1344_v20, 0.0 }
 0x2f8   :  { %v1544_v26 = vpack.c.bf16 %v1486_v22, %v1484_v21 }
 0x2f9   :  { %v1545_v27 = vpack.c.bf16 %v1487_v24, %v1485_v23  ;;  %v1347_v28 = vpop.f32.mrb[76].mxu0 }
 0x2fa   :  { %v1348_v29 = vadd.f32 %v1347_v28, %v4010_v32  ;;  %v1349_v17 = vpop.f32.mrb[77].mxu0 }
 0x2fb   :  { %v1350_v18 = vadd.f32 %v1349_v17, %v4013_v33  ;;  %v1351_v30 = vpop.f32.mrb[78].mxu0  ;;  %1828 = vmatprep.mubr.bf16.mxu1 %v1545_v27 }
 0x2fc   :  { %v1352_v31 = vadd.f32 %v1351_v30, %v4010_v32  ;;  %v1353_v34 = vpop.f32.mrb[79].mxu0  ;;  %1829 = vmatmul.mubr.bf16.gmra.mrb[72].mxu1 %v1544_v26  ;;  %v1488_v36 = vmax.f32 %v1348_v29, 0.0 }
 0x2fd   :  { %v1354_v35 = vadd.f32 %v1353_v34, %v4013_v33  ;;  %v1489_v38 = vmax.f32 %v1350_v18, 0.0 }
 0x2fe   :  { %v1490_v37 = vmax.f32 %v1352_v31, 0.0 }
 0x2ff   :  { %v1491_v39 = vmax.f32 %v1354_v35, 0.0 }
 0x300   :  { %v1546_v40 = vpack.c.bf16 %v1490_v37, %v1488_v36 }
 0x301   :  { %v1547_v41 = vpack.c.bf16 %v1491_v39, %v1489_v38  ;;  %v1357_v42 = vpop.f32.mrb[80].mxu0 }
 0x302   :  { %v1358_v43 = vadd.f32 %v1357_v42, %v4010_v32  ;;  %v1359_v44 = vpop.f32.mrb[81].mxu0 }
 0x303   :  { %v1360_v45 = vadd.f32 %v1359_v44, %v4013_v33  ;;  %v1361_v46 = vpop.f32.mrb[82].mxu0  ;;  %1838 = vmatprep.mubr.bf16.mxu1 %v1547_v41 }
 0x304   :  { %v1362_v47 = vadd.f32 %v1361_v46, %v4010_v32  ;;  %v1363_v48 = vpop.f32.mrb[83].mxu0  ;;  %1839 = vmatmul.mubr.bf16.gmra.mrb[76].mxu1 %v1546_v40  ;;  %v1492_v50 = vmax.f32 %v1358_v43, 0.0 }
 0x305   :  { %v1364_v49 = vadd.f32 %v1363_v48, %v4013_v33  ;;  %v1493_v52 = vmax.f32 %v1360_v45, 0.0 }
 0x306   :  { %v1494_v51 = vmax.f32 %v1362_v47, 0.0 }
 0x307   :  { %v1495_v53 = vmax.f32 %v1364_v49, 0.0 }
 0x308   :  { %v1548_v54 = vpack.c.bf16 %v1494_v51, %v1492_v50 }
 0x309   :  { %v1549_v55 = vpack.c.bf16 %v1495_v53, %v1493_v52  ;;  %v1367_v56 = vpop.f32.mrb[84].mxu0 }
 0x30a   :  { %v1368_v57 = vadd.f32 %v1367_v56, %v4010_v32  ;;  %v1369_v58 = vpop.f32.mrb[85].mxu0 }
 0x30b   :  { %v1370_v60 = vadd.f32 %v1369_v58, %v4013_v33  ;;  %v1371_v62 = vpop.f32.mrb[86].mxu0  ;;  %1848 = vmatprep.mubr.bf16.mxu1 %v1549_v55 }
 0x30c   :  { %v1372_v63 = vadd.f32 %v1371_v62, %v4010_v32  ;;  %v1373_v2 = vpop.f32.mrb[87].mxu0  ;;  %1849 = vmatmul.mubr.bf16.gmra.mrb[80].mxu1 %v1548_v54  ;;  %v1496_v4 = vmax.f32 %v1368_v57, 0.0 }
 0x30d   :  { %v1374_v3 = vadd.f32 %v1373_v2, %v4013_v33  ;;  %v1497_v6 = vmax.f32 %v1370_v60, 0.0 }
 0x30e   :  { %v1498_v5 = vmax.f32 %v1372_v63, 0.0 }
 0x30f   :  { %v1499_v7 = vmax.f32 %v1374_v3, 0.0 }
 0x310   :  { %v1550_v8 = vpack.c.bf16 %v1498_v5, %v1496_v4 }
 0x311   :  { %v1551_v9 = vpack.c.bf16 %v1499_v7, %v1497_v6  ;;  %v1377_v10 = vpop.f32.mrb[88].mxu0 }
 0x312   :  { %v1378_v11 = vadd.f32 %v1377_v10, %v4010_v32  ;;  %v1379_v12 = vpop.f32.mrb[89].mxu0 }
 0x313   :  { %v1380_v13 = vadd.f32 %v1379_v12, %v4013_v33  ;;  %v1381_v14 = vpop.f32.mrb[90].mxu0  ;;  %1858 = vmatprep.mubr.bf16.mxu1 %v1551_v9 }
 0x314   :  { %v1382_v15 = vadd.f32 %v1381_v14, %v4010_v32  ;;  %v1383_v0 = vpop.f32.mrb[91].mxu0  ;;  %1859 = vmatmul.mubr.bf16.gmra.mrb[84].mxu1 %v1550_v8  ;;  %v1500_v16 = vmax.f32 %v1378_v11, 0.0 }
 0x315   :  { %v1384_v1 = vadd.f32 %v1383_v0, %v4013_v33  ;;  %v1501_v20 = vmax.f32 %v1380_v13, 0.0 }
 0x316   :  { %v1502_v19 = vmax.f32 %v1382_v15, 0.0 }
 0x317   :  { %v1503_v21 = vmax.f32 %v1384_v1, 0.0 }
 0x318   :  { %v1552_v22 = vpack.c.bf16 %v1502_v19, %v1500_v16 }
 0x319   :  { %v1553_v23 = vpack.c.bf16 %v1503_v21, %v1501_v20  ;;  %v1387_v24 = vpop.f32.mrb[92].mxu0 }
 0x31a   :  { %v1388_v25 = vadd.f32 %v1387_v24, %v4010_v32  ;;  %v1389_v26 = vpop.f32.mrb[93].mxu0 }
 0x31b   :  { %v1390_v27 = vadd.f32 %v1389_v26, %v4013_v33  ;;  %v1391_v28 = vpop.f32.mrb[94].mxu0  ;;  %1868 = vmatprep.mubr.bf16.mxu1 %v1553_v23 }
 0x31c   :  { %v1392_v29 = vadd.f32 %v1391_v28, %v4010_v32  ;;  %v1393_v17 = vpop.f32.mrb[95].mxu0  ;;  %1869 = vmatmul.mubr.bf16.gmra.mrb[88].mxu1 %v1552_v22  ;;  %v1504_v30 = vmax.f32 %v1388_v25, 0.0 }
 0x31d   :  { %v1394_v18 = vadd.f32 %v1393_v17, %v4013_v33  ;;  %v1505_v34 = vmax.f32 %v1390_v27, 0.0 }
 0x31e   :  { %v1506_v31 = vmax.f32 %v1392_v29, 0.0 }
 0x31f   :  { %v1507_v35 = vmax.f32 %v1394_v18, 0.0 }
 0x320   :  { %v1554_v36 = vpack.c.bf16 %v1506_v31, %v1504_v30 }
 0x321   :  { %v1555_v37 = vpack.c.bf16 %v1507_v35, %v1505_v34  ;;  %v1397_v38 = vpop.f32.mrb[96].mxu0 }
 0x322   :  { %v1398_v39 = vadd.f32 %v1397_v38, %v4010_v32  ;;  %v1399_v40 = vpop.f32.mrb[97].mxu0 }
 0x323   :  { %v1400_v41 = vadd.f32 %v1399_v40, %v4013_v33  ;;  %v1401_v42 = vpop.f32.mrb[98].mxu0  ;;  %1878 = vmatprep.mubr.bf16.mxu1 %v1555_v37 }
 0x324   :  { %v1402_v43 = vadd.f32 %v1401_v42, %v4010_v32  ;;  %v1403_v44 = vpop.f32.mrb[99].mxu0  ;;  %1879 = vmatmul.mubr.bf16.gmra.mrb[92].mxu1 %v1554_v36  ;;  %v1508_v46 = vmax.f32 %v1398_v39, 0.0 }
 0x325   :  { %v1404_v45 = vadd.f32 %v1403_v44, %v4013_v33  ;;  %v1509_v48 = vmax.f32 %v1400_v41, 0.0 }
 0x326   :  { %v1510_v47 = vmax.f32 %v1402_v43, 0.0 }
 0x327   :  { %v1511_v49 = vmax.f32 %v1404_v45, 0.0 }
 0x328   :  { %v1556_v50 = vpack.c.bf16 %v1510_v47, %v1508_v46 }
 0x329   :  { %v1557_v51 = vpack.c.bf16 %v1511_v49, %v1509_v48  ;;  %v1407_v52 = vpop.f32.mrb[100].mxu0 }
 0x32a   :  { %v1408_v53 = vadd.f32 %v1407_v52, %v4010_v32  ;;  %v1409_v54 = vpop.f32.mrb[101].mxu0 }
 0x32b   :  { %v1410_v55 = vadd.f32 %v1409_v54, %v4013_v33  ;;  %v1411_v56 = vpop.f32.mrb[102].mxu0  ;;  %1888 = vmatprep.mubr.bf16.mxu1 %v1557_v51 }
 0x32c   :  { %v1412_v57 = vadd.f32 %v1411_v56, %v4010_v32  ;;  %v1413_v58 = vpop.f32.mrb[103].mxu0  ;;  %1889 = vmatmul.mubr.bf16.gmra.mrb[96].mxu1 %v1556_v50  ;;  %v1512_v62 = vmax.f32 %v1408_v53, 0.0 }
 0x32d   :  { %v1414_v60 = vadd.f32 %v1413_v58, %v4013_v33  ;;  %v1513_v2 = vmax.f32 %v1410_v55, 0.0 }
 0x32e   :  { %v1514_v63 = vmax.f32 %v1412_v57, 0.0 }
 0x32f   :  { %v1515_v3 = vmax.f32 %v1414_v60, 0.0 }
 0x330   :  { %v1558_v4 = vpack.c.bf16 %v1514_v63, %v1512_v62 }
 0x331   :  { %v1559_v5 = vpack.c.bf16 %v1515_v3, %v1513_v2  ;;  %v1417_v6 = vpop.f32.mrb[104].mxu0 }
 0x332   :  { %v1418_v7 = vadd.f32 %v1417_v6, %v4010_v32  ;;  %v1419_v8 = vpop.f32.mrb[105].mxu0 }
 0x333   :  { %v1420_v9 = vadd.f32 %v1419_v8, %v4013_v33  ;;  %v1421_v10 = vpop.f32.mrb[106].mxu0  ;;  %1898 = vmatprep.mubr.bf16.mxu1 %v1559_v5 }
 0x334   :  { %v1422_v11 = vadd.f32 %v1421_v10, %v4010_v32  ;;  %v1423_v12 = vpop.f32.mrb[107].mxu0  ;;  %1899 = vmatmul.mubr.bf16.gmra.mrb[100].mxu1 %v1558_v4  ;;  %v1516_v14 = vmax.f32 %v1418_v7, 0.0 }
 0x335   :  { %v1424_v13 = vadd.f32 %v1423_v12, %v4013_v33  ;;  %v1517_v0 = vmax.f32 %v1420_v9, 0.0 }
 0x336   :  { %v1518_v15 = vmax.f32 %v1422_v11, 0.0 }
 0x337   :  { %v1519_v1 = vmax.f32 %v1424_v13, 0.0 }
 0x338   :  { %v1560_v16 = vpack.c.bf16 %v1518_v15, %v1516_v14 }
 0x339   :  { %v1561_v19 = vpack.c.bf16 %v1519_v1, %v1517_v0  ;;  %v1427_v20 = vpop.f32.mrb[108].mxu0 }
 0x33a   :  { %v1428_v21 = vadd.f32 %v1427_v20, %v4010_v32  ;;  %v1429_v22 = vpop.f32.mrb[109].mxu0 }
 0x33b   :  { %v1430_v23 = vadd.f32 %v1429_v22, %v4013_v33  ;;  %v1431_v24 = vpop.f32.mrb[110].mxu0  ;;  %1908 = vmatprep.mubr.bf16.mxu1 %v1561_v19 }
 0x33c   :  { %v1432_v25 = vadd.f32 %v1431_v24, %v4010_v32  ;;  %v1433_v26 = vpop.f32.mrb[111].mxu0  ;;  %1909 = vmatmul.mubr.bf16.gmra.mrb[104].mxu1 %v1560_v16  ;;  %v1520_v28 = vmax.f32 %v1428_v21, 0.0 }
 0x33d   :  { %v1434_v27 = vadd.f32 %v1433_v26, %v4013_v33  ;;  %v1521_v17 = vmax.f32 %v1430_v23, 0.0 }
 0x33e   :  { %v1522_v29 = vmax.f32 %v1432_v25, 0.0 }
 0x33f   :  { %v1523_v18 = vmax.f32 %v1434_v27, 0.0 }
 0x340   :  { %v1562_v30 = vpack.c.bf16 %v1522_v29, %v1520_v28 }
 0x341   :  { %v1563_v31 = vpack.c.bf16 %v1523_v18, %v1521_v17  ;;  %v1437_v34 = vpop.f32.mrb[112].mxu0  ;;  %v1604_v17 = vld [vmem:[%s4318_s8] sm:$0x3] }
 0x342   :  { %v1438_v35 = vadd.f32 %v1437_v34, %v4010_v32  ;;  %v1439_v36 = vpop.f32.mrb[113].mxu0  ;;  %v4119_v18 = vrot.slane %v1604_v17, %v3844_v59 }
 0x343   :  { %v1440_v37 = vadd.f32 %v1439_v36, %v4013_v33  ;;  %v1441_v38 = vpop.f32.mrb[114].mxu0  ;;  %1918 = vmatprep.mubr.bf16.mxu1 %v1563_v31 }
 0x344   :  { %v1442_v39 = vadd.f32 %v1441_v38, %v4010_v32  ;;  %v1443_v40 = vpop.f32.mrb[115].mxu0  ;;  %1919 = vmatmul.mubr.bf16.gmra.mrb[108].mxu1 %v1562_v30  ;;  %v1524_v42 = vmax.f32 %v1438_v35, 0.0  ;;  %v3500_v38 = vld [vmem:[#allocation7] sm:$0xff]  }
 0x345   :  { %v1444_v41 = vadd.f32 %v1443_v40, %v4013_v33  ;;  %v1525_v44 = vmax.f32 %v1440_v37, 0.0  ;;  %3261 = vmatprep.subr.bf16.mxu1 %v3500_v38 }
 0x346   :  { %v1526_v43 = vmax.f32 %v1442_v39, 0.0  ;;  %v3501_v39 = vld [vmem:[#allocation7 + $0x8] sm:$0xff]   ;;  %3262 = vmatpush3.bf16.msra.mxu1 %v3500_v38 }
 0x347   :  { %v1527_v45 = vmax.f32 %v1444_v41, 0.0  ;;  %3263 = vmatprep.subr.bf16.mxu1 %v3501_v39 }
 0x348   :  { %v1564_v46 = vpack.c.bf16 %v1526_v43, %v1524_v42 }
 0x349   :  { %v1565_v47 = vpack.c.bf16 %v1527_v45, %v1525_v44  ;;  %v1447_v48 = vpop.f32.mrb[116].mxu0  ;;  %v3502_v44 = vld [vmem:[#allocation7 + $0x10] sm:$0xff]  }
 0x34a   :  { %v1448_v49 = vadd.f32 %v1447_v48, %v4010_v32  ;;  %v1449_v50 = vpop.f32.mrb[117].mxu0  ;;  %3264 = vmatpush3.bf16.msra.mxu1 %v3501_v39 }
 0x34b   :  { %v1450_v51 = vadd.f32 %v1449_v50, %v4013_v33  ;;  %v1451_v52 = vpop.f32.mrb[118].mxu0  ;;  %1928 = vmatprep.mubr.bf16.mxu1 %v1565_v47  ;;  %3265 = vmatprep.subr.bf16.mxu1 %v3502_v44 }
 0x34c   :  { %v1452_v53 = vadd.f32 %v1451_v52, %v4010_v32  ;;  %v1453_v54 = vpop.f32.mrb[119].mxu0  ;;  %1929 = vmatmul.mubr.bf16.gmra.mrb[112].mxu1 %v1564_v46  ;;  %v1528_v56 = vmax.f32 %v1448_v49, 0.0 }
 0x34d   :  { %v1454_v55 = vadd.f32 %v1453_v54, %v4013_v33  ;;  %v1529_v58 = vmax.f32 %v1450_v51, 0.0 }
 0x34e   :  { %v1530_v57 = vmax.f32 %v1452_v53, 0.0  ;;  %v3503_v53 = vld [vmem:[#allocation7 + $0x18] sm:$0xff]   ;;  %3266 = vmatpush3.bf16.msra.mxu1 %v3502_v44 }
 0x34f   :  { %v1531_v60 = vmax.f32 %v1454_v55, 0.0  ;;  %3267 = vmatprep.subr.bf16.mxu1 %v3503_v53 }
 0x350   :  { %v1566_v62 = vpack.c.bf16 %v1530_v57, %v1528_v56 }
 0x351   :  { %v1567_v63 = vpack.c.bf16 %v1531_v60, %v1529_v58  ;;  %v1457_v2 = vpop.f32.mrb[120].mxu0 }
 0x352   :  { %v1458_v3 = vadd.f32 %v1457_v2, %v4010_v32  ;;  %v1459_v4 = vpop.f32.mrb[121].mxu0  ;;  %3268 = vmatpush3.bf16.msra.mxu1 %v3503_v53 }
 0x353   :  { %v1460_v5 = vadd.f32 %v1459_v4, %v4013_v33  ;;  %v1461_v6 = vpop.f32.mrb[122].mxu0  ;;  %1938 = vmatprep.mubr.bf16.mxu1 %v1567_v63 }
 0x354   :  { %v1462_v7 = vadd.f32 %v1461_v6, %v4010_v32  ;;  %v1463_v8 = vpop.f32.mrb[123].mxu0  ;;  %1939 = vmatmul.mubr.bf16.gmra.mrb[116].mxu1 %v1566_v62  ;;  %v1532_v10 = vmax.f32 %v1458_v3, 0.0 }
 0x355   :  { %v1464_v9 = vadd.f32 %v1463_v8, %v4013_v33  ;;  %v1533_v12 = vmax.f32 %v1460_v5, 0.0 }
 0x356   :  { %v1534_v11 = vmax.f32 %v1462_v7, 0.0 }
 0x357   :  { %v1535_v13 = vmax.f32 %v1464_v9, 0.0 }
 0x358   :  { %v1568_v14 = vpack.c.bf16 %v1534_v11, %v1532_v10 }
 0x359   :  { %v1569_v15 = vpack.c.bf16 %v1535_v13, %v1533_v12  ;;  %v1467_v0 = vpop.f32.mrb[124].mxu0 }
 0x35a   :  { %v1468_v1 = vadd.f32 %v1467_v0, %v4010_v32  ;;  %v1469_v16 = vpop.f32.mrb[125].mxu0 }
 0x35b   :  { %v1470_v19 = vadd.f32 %v1469_v16, %v4013_v33  ;;  %v1471_v20 = vpop.f32.mrb[126].mxu0  ;;  %1948 = vmatprep.mubr.bf16.mxu1 %v1569_v15 }
 0x35c   :  { %v1472_v21 = vadd.f32 %v1471_v20, %v4010_v32  ;;  %v1473_v22 = vpop.f32.mrb[127].mxu0  ;;  %1949 = vmatmul.mubr.bf16.gmra.mrb[120].mxu1 %v1568_v14  ;;  %v1536_v24 = vmax.f32 %v1468_v1, 0.0  ;;  %v4122_v32 = vrot.slane %v1604_v17, %v3849_v61 }
 0x35d   :  { %v1474_v23 = vadd.f32 %v1473_v22, %v4013_v33  ;;  %v1537_v26 = vmax.f32 %v1470_v19, 0.0 }
 0x35e   :  { %v1538_v25 = vmax.f32 %v1472_v21, 0.0 }
 0x35f   :  { %v1539_v27 = vmax.f32 %v1474_v23, 0.0 }
 0x360   :  { %v1570_v28 = vpack.c.bf16 %v1538_v25, %v1536_v24 }
 0x361   :  { %v1571_v29 = vpack.c.bf16 %v1539_v27, %v1537_v26 }
 0x363   :  { %1958 = vmatprep.mubr.bf16.mxu1 %v1571_v29 }
 0x364   :  { %1959 = vmatmul.mubr.bf16.gmra.mrb[124].mxu1 %v1570_v28 }
 0x3bf   :  { %v1810_v30 = vpop.f32.mrb[64].mxu1 }
 0x3c0   :  { %v1811_v33 = vadd.f32 %v1810_v30, %v4119_v18  ;;  %v1812_v31 = vpop.f32.mrb[65].mxu1 }
 0x3c1   :  { %v1813_v34 = vadd.f32 %v1812_v31, %v4122_v32  ;;  %v1814_v35 = vpop.f32.mrb[66].mxu1 }
 0x3c2   :  { %v1815_v36 = vadd.f32 %v1814_v35, %v4119_v18  ;;  %v1816_v37 = vpop.f32.mrb[67].mxu1  ;;  %v1969_v41 = vmax.f32 %v1811_v33, 0.0 }
 0x3c3   :  { %v1817_v40 = vadd.f32 %v1816_v37, %v4122_v32  ;;  %v1970_v42 = vmax.f32 %v1813_v34, 0.0 }
 0x3c4   :  { %v1971_v59 = vmax.f32 %v1815_v36, 0.0 }
 0x3c5   :  { %v1972_v61 = vmax.f32 %v1817_v40, 0.0 }
 0x3c6   :  { %v2033_v43 = vpack.c.bf16 %v1971_v59, %v1969_v41 }
 0x3c7   :  { %v2034_v45 = vpack.c.bf16 %v1972_v61, %v1970_v42  ;;  %v1820_v46 = vpop.f32.mrb[68].mxu1 }
 0x3c8   :  { %v1821_v47 = vadd.f32 %v1820_v46, %v4119_v18  ;;  %v1822_v48 = vpop.f32.mrb[69].mxu1 }
 0x3c9   :  { %v1823_v49 = vadd.f32 %v1822_v48, %v4122_v32  ;;  %v1824_v50 = vpop.f32.mrb[70].mxu1  ;;  %2232 = vmatprep.mubr.bf16.mxu0 %v2034_v45 }
 0x3ca   :  { %v1825_v51 = vadd.f32 %v1824_v50, %v4119_v18  ;;  %v1826_v52 = vpop.f32.mrb[71].mxu1  ;;  %2233 = vmatmul.mubr.bf16.vlgmr.msra.gmra.mrb[128].mxu0 %v2033_v43  ;;  %v1973_v55 = vmax.f32 %v1821_v47, 0.0 }
 0x3cb   :  { %v1827_v54 = vadd.f32 %v1826_v52, %v4122_v32  ;;  %v1974_v57 = vmax.f32 %v1823_v49, 0.0 }
 0x3cc   :  { %v1975_v56 = vmax.f32 %v1825_v51, 0.0 }
 0x3cd   :  { %v1976_v58 = vmax.f32 %v1827_v54, 0.0 }
 0x3ce   :  { %v2035_v60 = vpack.c.bf16 %v1975_v56, %v1973_v55 }
 0x3cf   :  { %v2036_v62 = vpack.c.bf16 %v1976_v58, %v1974_v57  ;;  %v1830_v63 = vpop.f32.mrb[72].mxu1 }
 0x3d0   :  { %v1831_v2 = vadd.f32 %v1830_v63, %v4119_v18  ;;  %v1832_v3 = vpop.f32.mrb[73].mxu1 }
 0x3d1   :  { %v1833_v4 = vadd.f32 %v1832_v3, %v4122_v32  ;;  %v1834_v5 = vpop.f32.mrb[74].mxu1  ;;  %2240 = vmatprep.mubr.bf16.mxu0 %v2036_v62 }
 0x3d2   :  { %v1835_v6 = vadd.f32 %v1834_v5, %v4119_v18  ;;  %v1836_v7 = vpop.f32.mrb[75].mxu1  ;;  %2241 = vmatmul.mubr.bf16.gmra.mrb[132].mxu0 %v2035_v60  ;;  %v1977_v9 = vmax.f32 %v1831_v2, 0.0 }
 0x3d3   :  { %v1837_v8 = vadd.f32 %v1836_v7, %v4122_v32  ;;  %v1978_v11 = vmax.f32 %v1833_v4, 0.0 }
 0x3d4   :  { %v1979_v10 = vmax.f32 %v1835_v6, 0.0 }
 0x3d5   :  { %v1980_v12 = vmax.f32 %v1837_v8, 0.0 }
 0x3d6   :  { %v2037_v13 = vpack.c.bf16 %v1979_v10, %v1977_v9 }
 0x3d7   :  { %v2038_v14 = vpack.c.bf16 %v1980_v12, %v1978_v11  ;;  %v1840_v15 = vpop.f32.mrb[76].mxu1 }
 0x3d8   :  { %v1841_v0 = vadd.f32 %v1840_v15, %v4119_v18  ;;  %v1842_v1 = vpop.f32.mrb[77].mxu1 }
 0x3d9   :  { %v1843_v16 = vadd.f32 %v1842_v1, %v4122_v32  ;;  %v1844_v19 = vpop.f32.mrb[78].mxu1  ;;  %2248 = vmatprep.mubr.bf16.mxu0 %v2038_v14 }
 0x3da   :  { %v1845_v20 = vadd.f32 %v1844_v19, %v4119_v18  ;;  %v1846_v21 = vpop.f32.mrb[79].mxu1  ;;  %2249 = vmatmul.mubr.bf16.gmra.mrb[136].mxu0 %v2037_v13  ;;  %v1981_v23 = vmax.f32 %v1841_v0, 0.0 }
 0x3db   :  { %v1847_v22 = vadd.f32 %v1846_v21, %v4122_v32  ;;  %v1982_v25 = vmax.f32 %v1843_v16, 0.0 }
 0x3dc   :  { %v1983_v24 = vmax.f32 %v1845_v20, 0.0 }
 0x3dd   :  { %v1984_v26 = vmax.f32 %v1847_v22, 0.0 }
 0x3de   :  { %v2039_v27 = vpack.c.bf16 %v1983_v24, %v1981_v23 }
 0x3df   :  { %v2040_v28 = vpack.c.bf16 %v1984_v26, %v1982_v25  ;;  %v1850_v29 = vpop.f32.mrb[80].mxu1 }
 0x3e0   :  { %v1851_v17 = vadd.f32 %v1850_v29, %v4119_v18  ;;  %v1852_v30 = vpop.f32.mrb[81].mxu1 }
 0x3e1   :  { %v1853_v33 = vadd.f32 %v1852_v30, %v4122_v32  ;;  %v1854_v31 = vpop.f32.mrb[82].mxu1  ;;  %2256 = vmatprep.mubr.bf16.mxu0 %v2040_v28 }
 0x3e2   :  { %v1855_v34 = vadd.f32 %v1854_v31, %v4119_v18  ;;  %v1856_v35 = vpop.f32.mrb[83].mxu1  ;;  %2257 = vmatmul.mubr.bf16.gmra.mrb[140].mxu0 %v2039_v27  ;;  %v1985_v37 = vmax.f32 %v1851_v17, 0.0 }
 0x3e3   :  { %v1857_v36 = vadd.f32 %v1856_v35, %v4122_v32  ;;  %v1986_v39 = vmax.f32 %v1853_v33, 0.0 }
 0x3e4   :  { %v1987_v38 = vmax.f32 %v1855_v34, 0.0 }
 0x3e5   :  { %v1988_v40 = vmax.f32 %v1857_v36, 0.0 }
 0x3e6   :  { %v2041_v41 = vpack.c.bf16 %v1987_v38, %v1985_v37 }
 0x3e7   :  { %v2042_v59 = vpack.c.bf16 %v1988_v40, %v1986_v39  ;;  %v1860_v42 = vpop.f32.mrb[84].mxu1 }
 0x3e8   :  { %v1861_v61 = vadd.f32 %v1860_v42, %v4119_v18  ;;  %v1862_v43 = vpop.f32.mrb[85].mxu1 }
 0x3e9   :  { %v1863_v44 = vadd.f32 %v1862_v43, %v4122_v32  ;;  %v1864_v45 = vpop.f32.mrb[86].mxu1  ;;  %2264 = vmatprep.mubr.bf16.mxu0 %v2042_v59 }
 0x3ea   :  { %v1865_v46 = vadd.f32 %v1864_v45, %v4119_v18  ;;  %v1866_v47 = vpop.f32.mrb[87].mxu1  ;;  %2265 = vmatmul.mubr.bf16.gmra.mrb[144].mxu0 %v2041_v41  ;;  %v1989_v49 = vmax.f32 %v1861_v61, 0.0 }
 0x3eb   :  { %v1867_v48 = vadd.f32 %v1866_v47, %v4122_v32  ;;  %v1990_v51 = vmax.f32 %v1863_v44, 0.0 }
 0x3ec   :  { %v1991_v50 = vmax.f32 %v1865_v46, 0.0 }
 0x3ed   :  { %v1992_v52 = vmax.f32 %v1867_v48, 0.0 }
 0x3ee   :  { %v2043_v53 = vpack.c.bf16 %v1991_v50, %v1989_v49 }
 0x3ef   :  { %v2044_v54 = vpack.c.bf16 %v1992_v52, %v1990_v51  ;;  %v1870_v55 = vpop.f32.mrb[88].mxu1 }
 0x3f0   :  { %v1871_v56 = vadd.f32 %v1870_v55, %v4119_v18  ;;  %v1872_v57 = vpop.f32.mrb[89].mxu1 }
 0x3f1   :  { %v1873_v58 = vadd.f32 %v1872_v57, %v4122_v32  ;;  %v1874_v60 = vpop.f32.mrb[90].mxu1  ;;  %2272 = vmatprep.mubr.bf16.mxu0 %v2044_v54 }
 0x3f2   :  { %v1875_v62 = vadd.f32 %v1874_v60, %v4119_v18  ;;  %v1876_v63 = vpop.f32.mrb[91].mxu1  ;;  %2273 = vmatmul.mubr.bf16.gmra.mrb[148].mxu0 %v2043_v53  ;;  %v1993_v3 = vmax.f32 %v1871_v56, 0.0 }
 0x3f3   :  { %v1877_v2 = vadd.f32 %v1876_v63, %v4122_v32  ;;  %v1994_v5 = vmax.f32 %v1873_v58, 0.0 }
 0x3f4   :  { %v1995_v4 = vmax.f32 %v1875_v62, 0.0 }
 0x3f5   :  { %v1996_v6 = vmax.f32 %v1877_v2, 0.0 }
 0x3f6   :  { %v2045_v7 = vpack.c.bf16 %v1995_v4, %v1993_v3 }
 0x3f7   :  { %v2046_v8 = vpack.c.bf16 %v1996_v6, %v1994_v5  ;;  %v1880_v9 = vpop.f32.mrb[92].mxu1 }
 0x3f8   :  { %v1881_v10 = vadd.f32 %v1880_v9, %v4119_v18  ;;  %v1882_v11 = vpop.f32.mrb[93].mxu1 }
 0x3f9   :  { %v1883_v12 = vadd.f32 %v1882_v11, %v4122_v32  ;;  %v1884_v13 = vpop.f32.mrb[94].mxu1  ;;  %2280 = vmatprep.mubr.bf16.mxu0 %v2046_v8 }
 0x3fa   :  { %v1885_v14 = vadd.f32 %v1884_v13, %v4119_v18  ;;  %v1886_v15 = vpop.f32.mrb[95].mxu1  ;;  %2281 = vmatmul.mubr.bf16.gmra.mrb[152].mxu0 %v2045_v7  ;;  %v1997_v1 = vmax.f32 %v1881_v10, 0.0 }
 0x3fb   :  { %v1887_v0 = vadd.f32 %v1886_v15, %v4122_v32  ;;  %v1998_v19 = vmax.f32 %v1883_v12, 0.0 }
 0x3fc   :  { %v1999_v16 = vmax.f32 %v1885_v14, 0.0 }
 0x3fd   :  { %v2000_v20 = vmax.f32 %v1887_v0, 0.0 }
 0x3fe   :  { %v2047_v21 = vpack.c.bf16 %v1999_v16, %v1997_v1  ;;  %v3504_v16 = vld [vmem:[#allocation7 + $0x20] sm:$0xff]  }
 0x3ff   :  { %v2048_v22 = vpack.c.bf16 %v2000_v20, %v1998_v19  ;;  %v1890_v23 = vpop.f32.mrb[96].mxu1  ;;  %3269 = vmatprep.subr.bf16.mxu1 %v3504_v16 }
 0x400   :  { %v1891_v24 = vadd.f32 %v1890_v23, %v4119_v18  ;;  %v1892_v25 = vpop.f32.mrb[97].mxu1  ;;  %3270 = vmatpush3.bf16.msra.mxu1 %v3504_v16 }
 0x401   :  { %v1893_v26 = vadd.f32 %v1892_v25, %v4122_v32  ;;  %v1894_v27 = vpop.f32.mrb[98].mxu1  ;;  %2288 = vmatprep.mubr.bf16.mxu0 %v2048_v22 }
 0x402   :  { %v1895_v28 = vadd.f32 %v1894_v27, %v4119_v18  ;;  %v1896_v29 = vpop.f32.mrb[99].mxu1  ;;  %2289 = vmatmul.mubr.bf16.gmra.mrb[156].mxu0 %v2047_v21  ;;  %v2001_v30 = vmax.f32 %v1891_v24, 0.0 }
 0x403   :  { %v1897_v17 = vadd.f32 %v1896_v29, %v4122_v32  ;;  %v2002_v31 = vmax.f32 %v1893_v26, 0.0  ;;  %v3505_v26 = vld [vmem:[#allocation7 + $0x28] sm:$0xff]  }
 0x404   :  { %v2003_v33 = vmax.f32 %v1895_v28, 0.0  ;;  %3271 = vmatprep.subr.bf16.mxu1 %v3505_v26 }
 0x405   :  { %v2004_v34 = vmax.f32 %v1897_v17, 0.0  ;;  %3272 = vmatpush3.bf16.msra.mxu1 %v3505_v26 }
 0x406   :  { %v2049_v35 = vpack.c.bf16 %v2003_v33, %v2001_v30 }
 0x407   :  { %v2050_v36 = vpack.c.bf16 %v2004_v34, %v2002_v31  ;;  %v1900_v37 = vpop.f32.mrb[100].mxu1  ;;  %v3506_v34 = vld [vmem:[#allocation7 + $0x30] sm:$0xff]  }
 0x408   :  { %v1901_v38 = vadd.f32 %v1900_v37, %v4119_v18  ;;  %v1902_v39 = vpop.f32.mrb[101].mxu1  ;;  %3273 = vmatprep.subr.bf16.mxu1 %v3506_v34 }
 0x409   :  { %v1903_v40 = vadd.f32 %v1902_v39, %v4122_v32  ;;  %v1904_v41 = vpop.f32.mrb[102].mxu1  ;;  %2296 = vmatprep.mubr.bf16.mxu0 %v2050_v36  ;;  %3274 = vmatpush3.bf16.msra.mxu1 %v3506_v34 }
 0x40a   :  { %v1905_v59 = vadd.f32 %v1904_v41, %v4119_v18  ;;  %v1906_v42 = vpop.f32.mrb[103].mxu1  ;;  %2297 = vmatmul.mubr.bf16.gmra.mrb[160].mxu0 %v2049_v35  ;;  %v2005_v43 = vmax.f32 %v1901_v38, 0.0 }
 0x40b   :  { %v1907_v61 = vadd.f32 %v1906_v42, %v4122_v32  ;;  %v2006_v45 = vmax.f32 %v1903_v40, 0.0 }
 0x40c   :  { %v2007_v44 = vmax.f32 %v1905_v59, 0.0  ;;  %v3507_v59 = vld [vmem:[#allocation7 + $0x38] sm:$0xff]  }
 0x40d   :  { %v2008_v46 = vmax.f32 %v1907_v61, 0.0  ;;  %3275 = vmatprep.subr.bf16.mxu1 %v3507_v59 }
 0x40e   :  { %v2051_v47 = vpack.c.bf16 %v2007_v44, %v2005_v43  ;;  %3276 = vmatpush3.bf16.msra.mxu1 %v3507_v59 }
 0x40f   :  { %v2052_v48 = vpack.c.bf16 %v2008_v46, %v2006_v45  ;;  %v1910_v49 = vpop.f32.mrb[104].mxu1 }
 0x410   :  { %v1911_v50 = vadd.f32 %v1910_v49, %v4119_v18  ;;  %v1912_v51 = vpop.f32.mrb[105].mxu1 }
 0x411   :  { %v1913_v52 = vadd.f32 %v1912_v51, %v4122_v32  ;;  %v1914_v53 = vpop.f32.mrb[106].mxu1  ;;  %2304 = vmatprep.mubr.bf16.mxu0 %v2052_v48 }
 0x412   :  { %v1915_v54 = vadd.f32 %v1914_v53, %v4119_v18  ;;  %v1916_v55 = vpop.f32.mrb[107].mxu1  ;;  %2305 = vmatmul.mubr.bf16.gmra.mrb[164].mxu0 %v2051_v47  ;;  %v2009_v57 = vmax.f32 %v1911_v50, 0.0 }
 0x413   :  { %v1917_v56 = vadd.f32 %v1916_v55, %v4122_v32  ;;  %v2010_v60 = vmax.f32 %v1913_v52, 0.0 }
 0x414   :  { %v2011_v58 = vmax.f32 %v1915_v54, 0.0 }
 0x415   :  { %v2012_v62 = vmax.f32 %v1917_v56, 0.0 }
 0x416   :  { %v2053_v63 = vpack.c.bf16 %v2011_v58, %v2009_v57 }
 0x417   :  { %v2054_v2 = vpack.c.bf16 %v2012_v62, %v2010_v60  ;;  %v1920_v3 = vpop.f32.mrb[108].mxu1 }
 0x418   :  { %v1921_v4 = vadd.f32 %v1920_v3, %v4119_v18  ;;  %v1922_v5 = vpop.f32.mrb[109].mxu1 }
 0x419   :  { %v1923_v6 = vadd.f32 %v1922_v5, %v4122_v32  ;;  %v1924_v7 = vpop.f32.mrb[110].mxu1  ;;  %2312 = vmatprep.mubr.bf16.mxu0 %v2054_v2 }
 0x41a   :  { %v1925_v8 = vadd.f32 %v1924_v7, %v4119_v18  ;;  %v1926_v9 = vpop.f32.mrb[111].mxu1  ;;  %2313 = vmatmul.mubr.bf16.gmra.mrb[168].mxu0 %v2053_v63  ;;  %v2013_v11 = vmax.f32 %v1921_v4, 0.0 }
 0x41b   :  { %v1927_v10 = vadd.f32 %v1926_v9, %v4122_v32  ;;  %v2014_v13 = vmax.f32 %v1923_v6, 0.0 }
 0x41c   :  { %v2015_v12 = vmax.f32 %v1925_v8, 0.0 }
 0x41d   :  { %v2016_v14 = vmax.f32 %v1927_v10, 0.0 }
 0x41e   :  { %v2055_v15 = vpack.c.bf16 %v2015_v12, %v2013_v11 }
 0x41f   :  { %v2056_v0 = vpack.c.bf16 %v2016_v14, %v2014_v13  ;;  %v1930_v1 = vpop.f32.mrb[112].mxu1 }
 0x420   :  { %v1931_v19 = vadd.f32 %v1930_v1, %v4119_v18  ;;  %v1932_v20 = vpop.f32.mrb[113].mxu1 }
 0x421   :  { %v1933_v21 = vadd.f32 %v1932_v20, %v4122_v32  ;;  %v1934_v22 = vpop.f32.mrb[114].mxu1  ;;  %2320 = vmatprep.mubr.bf16.mxu0 %v2056_v0  ;;  %v4191_v0 = vld [vmem:[%s4320_s10] ss:$0 sm:$0xff] }
 0x422   :  { %v1935_v23 = vadd.f32 %v1934_v22, %v4119_v18  ;;  %v1936_v24 = vpop.f32.mrb[115].mxu1  ;;  %2321 = vmatmul.mubr.bf16.gmra.mrb[172].mxu0 %v2055_v15  ;;  %v2017_v27 = vmax.f32 %v1931_v19, 0.0 }
 0x423   :  { %v1937_v25 = vadd.f32 %v1936_v24, %v4122_v32  ;;  %v2018_v29 = vmax.f32 %v1933_v21, 0.0 }
 0x424   :  { %v2019_v28 = vmax.f32 %v1935_v23, 0.0 }
 0x425   :  { %v2020_v17 = vmax.f32 %v1937_v25, 0.0 }
 0x426   :  { %v2057_v30 = vpack.c.bf16 %v2019_v28, %v2017_v27 }
 0x427   :  { %v2058_v33 = vpack.c.bf16 %v2020_v17, %v2018_v29  ;;  %v1940_v31 = vpop.f32.mrb[116].mxu1 }
 0x428   :  { %v1941_v35 = vadd.f32 %v1940_v31, %v4119_v18  ;;  %v1942_v36 = vpop.f32.mrb[117].mxu1 }
 0x429   :  { %v1943_v37 = vadd.f32 %v1942_v36, %v4122_v32  ;;  %v1944_v38 = vpop.f32.mrb[118].mxu1  ;;  %2328 = vmatprep.mubr.bf16.mxu0 %v2058_v33 }
 0x42a   :  { %v1945_v39 = vadd.f32 %v1944_v38, %v4119_v18  ;;  %v1946_v40 = vpop.f32.mrb[119].mxu1  ;;  %2329 = vmatmul.mubr.bf16.gmra.mrb[176].mxu0 %v2057_v30  ;;  %v2021_v42 = vmax.f32 %v1941_v35, 0.0 }
 0x42b   :  { %v1947_v41 = vadd.f32 %v1946_v40, %v4122_v32  ;;  %v2022_v43 = vmax.f32 %v1943_v37, 0.0 }
 0x42c   :  { %v2023_v61 = vmax.f32 %v1945_v39, 0.0 }
 0x42d   :  { %v2024_v44 = vmax.f32 %v1947_v41, 0.0 }
 0x42e   :  { %v2059_v45 = vpack.c.bf16 %v2023_v61, %v2021_v42 }
 0x42f   :  { %v2060_v46 = vpack.c.bf16 %v2024_v44, %v2022_v43  ;;  %v1950_v47 = vpop.f32.mrb[120].mxu1 }
 0x430   :  { %v1951_v48 = vadd.f32 %v1950_v47, %v4119_v18  ;;  %v1952_v49 = vpop.f32.mrb[121].mxu1 }
 0x431   :  { %v1953_v50 = vadd.f32 %v1952_v49, %v4122_v32  ;;  %v1954_v51 = vpop.f32.mrb[122].mxu1  ;;  %2336 = vmatprep.mubr.bf16.mxu0 %v2060_v46 }
 0x432   :  { %v1955_v52 = vadd.f32 %v1954_v51, %v4119_v18  ;;  %v1956_v53 = vpop.f32.mrb[123].mxu1  ;;  %2337 = vmatmul.mubr.bf16.gmra.mrb[180].mxu0 %v2059_v45  ;;  %v2025_v55 = vmax.f32 %v1951_v48, 0.0 }
 0x433   :  { %v1957_v54 = vadd.f32 %v1956_v53, %v4122_v32  ;;  %v2026_v57 = vmax.f32 %v1953_v50, 0.0 }
 0x434   :  { %v2027_v56 = vmax.f32 %v1955_v52, 0.0 }
 0x435   :  { %v2028_v58 = vmax.f32 %v1957_v54, 0.0 }
 0x436   :  { %v2061_v60 = vpack.c.bf16 %v2027_v56, %v2025_v55 }
 0x437   :  { %v2062_v62 = vpack.c.bf16 %v2028_v58, %v2026_v57  ;;  %v1960_v63 = vpop.f32.mrb[124].mxu1 }
 0x438   :  { %v1961_v2 = vadd.f32 %v1960_v63, %v4119_v18  ;;  %v1962_v3 = vpop.f32.mrb[125].mxu1 }
 0x439   :  { %v1963_v4 = vadd.f32 %v1962_v3, %v4122_v32  ;;  %v1964_v5 = vpop.f32.mrb[126].mxu1  ;;  %2344 = vmatprep.mubr.bf16.mxu0 %v2062_v62 }
 0x43a   :  { %v1965_v6 = vadd.f32 %v1964_v5, %v4119_v18  ;;  %v1966_v7 = vpop.f32.mrb[127].mxu1  ;;  %2345 = vmatmul.mubr.bf16.gmra.mrb[184].mxu0 %v2061_v60  ;;  %v2029_v9 = vmax.f32 %v1961_v2, 0.0 }
 0x43b   :  { %v1967_v8 = vadd.f32 %v1966_v7, %v4122_v32  ;;  %v2030_v11 = vmax.f32 %v1963_v4, 0.0 }
 0x43c   :  { %v2031_v10 = vmax.f32 %v1965_v6, 0.0 }
 0x43d   :  { %v2032_v12 = vmax.f32 %v1967_v8, 0.0 }
 0x43e   :  { %v2063_v13 = vpack.c.bf16 %v2031_v10, %v2029_v9 }
 0x43f   :  { %v2064_v14 = vpack.c.bf16 %v2032_v12, %v2030_v11 }
 0x441   :  { %2352 = vmatprep.mubr.bf16.mxu0 %v2064_v14 }
 0x442   :  { %2353 = vmatmul.mubr.bf16.gmra.mrb[188].mxu0 %v2063_v13 }
 0x49d   :  { %v3141_v15 = vpop.f32.mrb[128].mxu0 }
 0x49e   :  { %v3142_v1 = vpop.f32.mrb[129].mxu0 }
 0x49f   :  { %v3143_v18 = vadd.f32 %v3142_v1, %v3141_v15  ;;  %v3144_v16 = vpop.f32.mrb[130].mxu0 }
 0x4a0   :  { %v3145_v19 = vpop.f32.mrb[131].mxu0 }
 0x4a1   :  { %v2235_v32 = vadd.f32 %v3143_v18, %v4191_v0  ;;  %v3146_v20 = vadd.f32 %v3145_v19, %v3144_v16 }
 0x4a3   :  { %v2238_v21 = vadd.f32 %v3146_v20, %v4191_v0  ;;  %v2361_v22 = vmax.f32 %v2235_v32, 0.0 }
 0x4a5   :  { %v2362_v23 = vmax.f32 %v2238_v21, 0.0  ;;  %v3147_v24 = vpop.f32.mrb[132].mxu0 }
 0x4a6   :  { %v3148_v25 = vpop.f32.mrb[133].mxu0 }
 0x4a7   :  { %v3149_v26 = vadd.f32 %v3148_v25, %v3147_v24  ;;  %v3150_v27 = vpop.f32.mrb[134].mxu0  ;;  %v2393_v28 = vpack.c.bf16 %v2362_v23, %v2361_v22 }
 0x4a8   :  { %v3151_v29 = vpop.f32.mrb[135].mxu0 }
 0x4a9   :  { %v2243_v17 = vadd.f32 %v3149_v26, %v4191_v0  ;;  %v3152_v30 = vadd.f32 %v3151_v29, %v3150_v27  ;;  %3277 = vmatprep.mubr.bf16.mxu1 %v2393_v28 }
 0x4ab   :  { %v2246_v33 = vadd.f32 %v3152_v30, %v4191_v0  ;;  %v2363_v31 = vmax.f32 %v2243_v17, 0.0 }
 0x4ad   :  { %v2364_v34 = vmax.f32 %v2246_v33, 0.0  ;;  %v3153_v35 = vpop.f32.mrb[136].mxu0 }
 0x4ae   :  { %v3154_v36 = vpop.f32.mrb[137].mxu0 }
 0x4af   :  { %v2394_v37 = vpack.c.bf16 %v2364_v34, %v2363_v31  ;;  %v3155_v38 = vadd.f32 %v3154_v36, %v3153_v35  ;;  %v3156_v39 = vpop.f32.mrb[138].mxu0 }
 0x4b0   :  { %v3157_v40 = vpop.f32.mrb[139].mxu0 }
 0x4b1   :  { %v2251_v41 = vadd.f32 %v3155_v38, %v4191_v0  ;;  %v3158_v59 = vadd.f32 %v3157_v40, %v3156_v39  ;;  %3278 = vmatmul.mubr.bf16.vlgmr.msra.gmra.mrb[128].mxu1 %v2394_v37 }
 0x4b3   :  { %v2254_v42 = vadd.f32 %v3158_v59, %v4191_v0  ;;  %v2365_v61 = vmax.f32 %v2251_v41, 0.0 }
 0x4b5   :  { %v2366_v43 = vmax.f32 %v2254_v42, 0.0  ;;  %v3159_v44 = vpop.f32.mrb[140].mxu0 }
 0x4b6   :  { %v3160_v45 = vpop.f32.mrb[141].mxu0 }
 0x4b7   :  { %v3161_v46 = vadd.f32 %v3160_v45, %v3159_v44  ;;  %v3162_v47 = vpop.f32.mrb[142].mxu0  ;;  %v2395_v48 = vpack.c.bf16 %v2366_v43, %v2365_v61 }
 0x4b8   :  { %v3163_v49 = vpop.f32.mrb[143].mxu0 }
 0x4b9   :  { %v2259_v50 = vadd.f32 %v3161_v46, %v4191_v0  ;;  %v3164_v51 = vadd.f32 %v3163_v49, %v3162_v47  ;;  %3281 = vmatprep.mubr.bf16.mxu1 %v2395_v48 }
 0x4bb   :  { %v2262_v52 = vadd.f32 %v3164_v51, %v4191_v0  ;;  %v2367_v53 = vmax.f32 %v2259_v50, 0.0 }
 0x4bd   :  { %v2368_v54 = vmax.f32 %v2262_v52, 0.0  ;;  %v3165_v55 = vpop.f32.mrb[144].mxu0 }
 0x4be   :  { %v3166_v56 = vpop.f32.mrb[145].mxu0 }
 0x4bf   :  { %v3167_v57 = vadd.f32 %v3166_v56, %v3165_v55  ;;  %v3168_v58 = vpop.f32.mrb[146].mxu0  ;;  %v2396_v60 = vpack.c.bf16 %v2368_v54, %v2367_v53 }
 0x4c0   :  { %v3169_v62 = vpop.f32.mrb[147].mxu0 }
 0x4c1   :  { %v2267_v63 = vadd.f32 %v3167_v57, %v4191_v0  ;;  %v3170_v2 = vadd.f32 %v3169_v62, %v3168_v58  ;;  %3282 = vmatmul.mubr.bf16.gmra.mrb[132].mxu1 %v2396_v60 }
 0x4c3   :  { %v2270_v3 = vadd.f32 %v3170_v2, %v4191_v0  ;;  %v2369_v4 = vmax.f32 %v2267_v63, 0.0 }
 0x4c5   :  { %v2370_v5 = vmax.f32 %v2270_v3, 0.0  ;;  %v3171_v6 = vpop.f32.mrb[148].mxu0 }
 0x4c6   :  { %v3172_v7 = vpop.f32.mrb[149].mxu0 }
 0x4c7   :  { %v3173_v8 = vadd.f32 %v3172_v7, %v3171_v6  ;;  %v3174_v9 = vpop.f32.mrb[150].mxu0  ;;  %v2397_v10 = vpack.c.bf16 %v2370_v5, %v2369_v4 }
 0x4c8   :  { %v3175_v11 = vpop.f32.mrb[151].mxu0 }
 0x4c9   :  { %v2275_v12 = vadd.f32 %v3173_v8, %v4191_v0  ;;  %v3176_v13 = vadd.f32 %v3175_v11, %v3174_v9  ;;  %3285 = vmatprep.mubr.bf16.mxu1 %v2397_v10 }
 0x4cb   :  { %v2278_v14 = vadd.f32 %v3176_v13, %v4191_v0  ;;  %v2371_v15 = vmax.f32 %v2275_v12, 0.0 }
 0x4cd   :  { %v2372_v1 = vmax.f32 %v2278_v14, 0.0  ;;  %v3177_v18 = vpop.f32.mrb[152].mxu0 }
 0x4ce   :  { %v3178_v16 = vpop.f32.mrb[153].mxu0 }
 0x4cf   :  { %v3179_v19 = vadd.f32 %v3178_v16, %v3177_v18  ;;  %v3180_v32 = vpop.f32.mrb[154].mxu0  ;;  %v2398_v20 = vpack.c.bf16 %v2372_v1, %v2371_v15 }
 0x4d0   :  { %v3181_v21 = vpop.f32.mrb[155].mxu0 }
 0x4d1   :  { %v2283_v22 = vadd.f32 %v3179_v19, %v4191_v0  ;;  %v3182_v23 = vadd.f32 %v3181_v21, %v3180_v32  ;;  %3286 = vmatmul.mubr.bf16.gmra.mrb[136].mxu1 %v2398_v20 }
 0x4d3   :  { %v2286_v24 = vadd.f32 %v3182_v23, %v4191_v0  ;;  %v2373_v25 = vmax.f32 %v2283_v22, 0.0 }
 0x4d5   :  { %v2374_v26 = vmax.f32 %v2286_v24, 0.0  ;;  %v3183_v27 = vpop.f32.mrb[156].mxu0 }
 0x4d6   :  { %v3184_v28 = vpop.f32.mrb[157].mxu0 }
 0x4d7   :  { %v3185_v29 = vadd.f32 %v3184_v28, %v3183_v27  ;;  %v3186_v17 = vpop.f32.mrb[158].mxu0  ;;  %v2399_v30 = vpack.c.bf16 %v2374_v26, %v2373_v25 }
 0x4d8   :  { %v3187_v33 = vpop.f32.mrb[159].mxu0 }
 0x4d9   :  { %v2291_v31 = vadd.f32 %v3185_v29, %v4191_v0  ;;  %v3188_v34 = vadd.f32 %v3187_v33, %v3186_v17  ;;  %3289 = vmatprep.mubr.bf16.mxu1 %v2399_v30 }
 0x4db   :  { %v2294_v35 = vadd.f32 %v3188_v34, %v4191_v0  ;;  %v2375_v36 = vmax.f32 %v2291_v31, 0.0 }
 0x4dd   :  { %v2376_v37 = vmax.f32 %v2294_v35, 0.0  ;;  %v3189_v38 = vpop.f32.mrb[160].mxu0 }
 0x4de   :  { %v3190_v39 = vpop.f32.mrb[161].mxu0 }
 0x4df   :  { %v3191_v40 = vadd.f32 %v3190_v39, %v3189_v38  ;;  %v3192_v41 = vpop.f32.mrb[162].mxu0  ;;  %v2400_v59 = vpack.c.bf16 %v2376_v37, %v2375_v36 }
 0x4e0   :  { %v3193_v42 = vpop.f32.mrb[163].mxu0 }
 0x4e1   :  { %v2299_v61 = vadd.f32 %v3191_v40, %v4191_v0  ;;  %v3194_v43 = vadd.f32 %v3193_v42, %v3192_v41  ;;  %3290 = vmatmul.mubr.bf16.gmra.mrb[140].mxu1 %v2400_v59 }
 0x4e3   :  { %v2302_v44 = vadd.f32 %v3194_v43, %v4191_v0  ;;  %v2377_v45 = vmax.f32 %v2299_v61, 0.0 }
 0x4e5   :  { %v2378_v46 = vmax.f32 %v2302_v44, 0.0  ;;  %v3195_v47 = vpop.f32.mrb[164].mxu0 }
 0x4e6   :  { %v3196_v48 = vpop.f32.mrb[165].mxu0 }
 0x4e7   :  { %v3197_v49 = vadd.f32 %v3196_v48, %v3195_v47  ;;  %v3198_v50 = vpop.f32.mrb[166].mxu0  ;;  %v2401_v51 = vpack.c.bf16 %v2378_v46, %v2377_v45 }
 0x4e8   :  { %v3199_v52 = vpop.f32.mrb[167].mxu0 }
 0x4e9   :  { %v2307_v53 = vadd.f32 %v3197_v49, %v4191_v0  ;;  %v3200_v54 = vadd.f32 %v3199_v52, %v3198_v50  ;;  %3293 = vmatprep.mubr.bf16.mxu1 %v2401_v51 }
 0x4eb   :  { %v2310_v55 = vadd.f32 %v3200_v54, %v4191_v0  ;;  %v2379_v56 = vmax.f32 %v2307_v53, 0.0 }
 0x4ed   :  { %v2380_v57 = vmax.f32 %v2310_v55, 0.0  ;;  %v3201_v58 = vpop.f32.mrb[168].mxu0 }
 0x4ee   :  { %v3202_v60 = vpop.f32.mrb[169].mxu0 }
 0x4ef   :  { %v3203_v62 = vadd.f32 %v3202_v60, %v3201_v58  ;;  %v3204_v63 = vpop.f32.mrb[170].mxu0  ;;  %v2402_v2 = vpack.c.bf16 %v2380_v57, %v2379_v56 }
 0x4f0   :  { %v3205_v3 = vpop.f32.mrb[171].mxu0 }
 0x4f1   :  { %v2315_v4 = vadd.f32 %v3203_v62, %v4191_v0  ;;  %v3206_v5 = vadd.f32 %v3205_v3, %v3204_v63  ;;  %3294 = vmatmul.mubr.bf16.gmra.mrb[144].mxu1 %v2402_v2  ;;  %v4228_v3 = vld [vmem:[%s4322_s12] ss:$0 sm:$0xff] }
 0x4f3   :  { %v2318_v6 = vadd.f32 %v3206_v5, %v4191_v0  ;;  %v2381_v7 = vmax.f32 %v2315_v4, 0.0 }
 0x4f5   :  { %v2382_v8 = vmax.f32 %v2318_v6, 0.0  ;;  %v3207_v9 = vpop.f32.mrb[172].mxu0 }
 0x4f6   :  { %v3208_v10 = vpop.f32.mrb[173].mxu0 }
 0x4f7   :  { %v3209_v11 = vadd.f32 %v3208_v10, %v3207_v9  ;;  %v3210_v12 = vpop.f32.mrb[174].mxu0  ;;  %v2403_v13 = vpack.c.bf16 %v2382_v8, %v2381_v7 }
 0x4f8   :  { %v3211_v14 = vpop.f32.mrb[175].mxu0 }
 0x4f9   :  { %v2323_v15 = vadd.f32 %v3209_v11, %v4191_v0  ;;  %v3212_v1 = vadd.f32 %v3211_v14, %v3210_v12  ;;  %3297 = vmatprep.mubr.bf16.mxu1 %v2403_v13 }
 0x4fb   :  { %v2326_v18 = vadd.f32 %v3212_v1, %v4191_v0  ;;  %v2383_v16 = vmax.f32 %v2323_v15, 0.0 }
 0x4fd   :  { %v2384_v19 = vmax.f32 %v2326_v18, 0.0  ;;  %v3213_v32 = vpop.f32.mrb[176].mxu0 }
 0x4fe   :  { %v3214_v20 = vpop.f32.mrb[177].mxu0 }
 0x4ff   :  { %v3215_v21 = vadd.f32 %v3214_v20, %v3213_v32  ;;  %v3216_v22 = vpop.f32.mrb[178].mxu0  ;;  %v2404_v23 = vpack.c.bf16 %v2384_v19, %v2383_v16 }
 0x500   :  { %v3217_v24 = vpop.f32.mrb[179].mxu0 }
 0x501   :  { %v2331_v25 = vadd.f32 %v3215_v21, %v4191_v0  ;;  %v3218_v26 = vadd.f32 %v3217_v24, %v3216_v22  ;;  %3298 = vmatmul.mubr.bf16.gmra.mrb[148].mxu1 %v2404_v23 }
 0x503   :  { %v2334_v27 = vadd.f32 %v3218_v26, %v4191_v0  ;;  %v2385_v28 = vmax.f32 %v2331_v25, 0.0 }
 0x505   :  { %v2386_v29 = vmax.f32 %v2334_v27, 0.0  ;;  %v3219_v17 = vpop.f32.mrb[180].mxu0 }
 0x506   :  { %v3220_v30 = vpop.f32.mrb[181].mxu0 }
 0x507   :  { %v3221_v33 = vadd.f32 %v3220_v30, %v3219_v17  ;;  %v3222_v31 = vpop.f32.mrb[182].mxu0  ;;  %v2405_v34 = vpack.c.bf16 %v2386_v29, %v2385_v28 }
 0x508   :  { %v3223_v35 = vpop.f32.mrb[183].mxu0 }
 0x509   :  { %v2339_v36 = vadd.f32 %v3221_v33, %v4191_v0  ;;  %v3224_v37 = vadd.f32 %v3223_v35, %v3222_v31  ;;  %3301 = vmatprep.mubr.bf16.mxu1 %v2405_v34 }
 0x50b   :  { %v2342_v38 = vadd.f32 %v3224_v37, %v4191_v0  ;;  %v2387_v39 = vmax.f32 %v2339_v36, 0.0 }
 0x50d   :  { %v2388_v40 = vmax.f32 %v2342_v38, 0.0  ;;  %v3225_v41 = vpop.f32.mrb[184].mxu0 }
 0x50e   :  { %v3226_v59 = vpop.f32.mrb[185].mxu0 }
 0x50f   :  { %v3227_v42 = vadd.f32 %v3226_v59, %v3225_v41  ;;  %v3228_v61 = vpop.f32.mrb[186].mxu0  ;;  %v2406_v43 = vpack.c.bf16 %v2388_v40, %v2387_v39 }
 0x510   :  { %v3229_v44 = vpop.f32.mrb[187].mxu0 }
 0x511   :  { %v2347_v45 = vadd.f32 %v3227_v42, %v4191_v0  ;;  %v3230_v46 = vadd.f32 %v3229_v44, %v3228_v61  ;;  %3302 = vmatmul.mubr.bf16.gmra.mrb[152].mxu1 %v2406_v43 }
 0x513   :  { %v2350_v47 = vadd.f32 %v3230_v46, %v4191_v0  ;;  %v2389_v48 = vmax.f32 %v2347_v45, 0.0 }
 0x515   :  { %v2390_v49 = vmax.f32 %v2350_v47, 0.0  ;;  %v3231_v50 = vpop.f32.mrb[188].mxu0 }
 0x516   :  { %v3232_v51 = vpop.f32.mrb[189].mxu0 }
 0x517   :  { %v3233_v52 = vadd.f32 %v3232_v51, %v3231_v50  ;;  %v3234_v53 = vpop.f32.mrb[190].mxu0  ;;  %v2407_v54 = vpack.c.bf16 %v2390_v49, %v2389_v48 }
 0x518   :  { %v3235_v55 = vpop.f32.mrb[191].mxu0 }
 0x519   :  { %v2355_v56 = vadd.f32 %v3233_v52, %v4191_v0  ;;  %v3236_v57 = vadd.f32 %v3235_v55, %v3234_v53  ;;  %3305 = vmatprep.mubr.bf16.mxu1 %v2407_v54 }
 0x51b   :  { %v2358_v58 = vadd.f32 %v3236_v57, %v4191_v0  ;;  %v2391_v60 = vmax.f32 %v2355_v56, 0.0 }
 0x51d   :  { %v2392_v62 = vmax.f32 %v2358_v58, 0.0 }
 0x51f   :  { %v2408_v63 = vpack.c.bf16 %v2392_v62, %v2391_v60 }
 0x521   :  { %3306 = vmatmul.mubr.bf16.gmra.mrb[156].mxu1 %v2408_v63 }
 0x584   :  { %v3279_v2 = vpop.f32.mrb[128].mxu1 }
 0x585   :  { %v2514_v4 = vpop.f32.mrb[129].mxu1  ;;  %v2523_v6 = vadd.f32 %v3279_v2, %v4228_v3 }
 0x586   :  { %v3280_v5 = vpop.f32.mrb[130].mxu1  ;;  %v2515_v9 = vadd.f32 %v4228_v3, %v2514_v4 }
 0x587   :  { %v2526_v7 = vadd.f32 %v3280_v5, %v4228_v3  ;;  %v2517_v8 = vpop.f32.mrb[131].mxu1 }
 0x588   :  { %v2518_v0 = vadd.f32 %v4228_v3, %v2517_v8 }
 0x589   :  { %v3038_v10 = vpack.c.bf16 %v2526_v7, %v2523_v6 }
 0x58a   :  { %v3033_v11 = vpack.c.bf16 %v2518_v0, %v2515_v9 }
 0x58b   :  { %3110 = vst [vmem:[%s4323_s13 + $0x8] sm:$0xff] %v3038_v10  }
 0x58c   :  { %3034 = vst [vmem:[%s4323_s13] sm:$0xff] %v3033_v11  }
 0x594   :  { %v3283_v12 = vpop.f32.mrb[132].mxu1 }
 0x595   :  { %v2530_v13 = vpop.f32.mrb[133].mxu1  ;;  %v2539_v15 = vadd.f32 %v3283_v12, %v4228_v3 }
 0x596   :  { %v3284_v14 = vpop.f32.mrb[134].mxu1  ;;  %v2531_v16 = vadd.f32 %v4228_v3, %v2530_v13 }
 0x597   :  { %v2542_v1 = vadd.f32 %v3284_v14, %v4228_v3  ;;  %v2533_v18 = vpop.f32.mrb[135].mxu1 }
 0x598   :  { %v2534_v19 = vadd.f32 %v4228_v3, %v2533_v18 }
 0x599   :  { %v3048_v32 = vpack.c.bf16 %v2542_v1, %v2539_v15 }
 0x59a   :  { %v3043_v20 = vpack.c.bf16 %v2534_v19, %v2531_v16 }
 0x59b   :  { %3112 = vst [vmem:[%s4323_s13 + $0x18] sm:$0xff] %v3048_v32  }
 0x59c   :  { %3111 = vst [vmem:[%s4323_s13 + $0x10] sm:$0xff] %v3043_v20  }
 0x5a4   :  { %v3287_v21 = vpop.f32.mrb[136].mxu1 }
 0x5a5   :  { %v2546_v22 = vpop.f32.mrb[137].mxu1  ;;  %v2555_v24 = vadd.f32 %v3287_v21, %v4228_v3 }
 0x5a6   :  { %v3288_v23 = vpop.f32.mrb[138].mxu1  ;;  %v2547_v27 = vadd.f32 %v4228_v3, %v2546_v22 }
 0x5a7   :  { %v2558_v25 = vadd.f32 %v3288_v23, %v4228_v3  ;;  %v2549_v26 = vpop.f32.mrb[139].mxu1 }
 0x5a8   :  { %v2550_v28 = vadd.f32 %v4228_v3, %v2549_v26 }
 0x5a9   :  { %v3058_v29 = vpack.c.bf16 %v2558_v25, %v2555_v24 }
 0x5aa   :  { %v3053_v17 = vpack.c.bf16 %v2550_v28, %v2547_v27 }
 0x5ab   :  { %3114 = vst [vmem:[%s4323_s13 + $0x28] sm:$0xff] %v3058_v29  }
 0x5ac   :  { %3113 = vst [vmem:[%s4323_s13 + $0x20] sm:$0xff] %v3053_v17  }
 0x5b4   :  { %v3291_v30 = vpop.f32.mrb[140].mxu1 }
 0x5b5   :  { %v2562_v33 = vpop.f32.mrb[141].mxu1  ;;  %v2571_v34 = vadd.f32 %v3291_v30, %v4228_v3 }
 0x5b6   :  { %v3292_v31 = vpop.f32.mrb[142].mxu1  ;;  %v2563_v37 = vadd.f32 %v4228_v3, %v2562_v33 }
 0x5b7   :  { %v2574_v35 = vadd.f32 %v3292_v31, %v4228_v3  ;;  %v2565_v36 = vpop.f32.mrb[143].mxu1 }
 0x5b8   :  { %v2566_v38 = vadd.f32 %v4228_v3, %v2565_v36 }
 0x5b9   :  { %v3068_v39 = vpack.c.bf16 %v2574_v35, %v2571_v34 }
 0x5ba   :  { %v3063_v40 = vpack.c.bf16 %v2566_v38, %v2563_v37 }
 0x5bb   :  { %3116 = vst [vmem:[%s4323_s13 + $0x38] sm:$0xff] %v3068_v39  }
 0x5bc   :  { %3115 = vst [vmem:[%s4323_s13 + $0x30] sm:$0xff] %v3063_v40  }
 0x5c4   :  { %v3295_v41 = vpop.f32.mrb[144].mxu1 }
 0x5c5   :  { %v2578_v59 = vpop.f32.mrb[145].mxu1  ;;  %v2587_v61 = vadd.f32 %v3295_v41, %v4228_v3 }
 0x5c6   :  { %v3296_v42 = vpop.f32.mrb[146].mxu1  ;;  %v2579_v45 = vadd.f32 %v4228_v3, %v2578_v59 }
 0x5c7   :  { %v2590_v43 = vadd.f32 %v3296_v42, %v4228_v3  ;;  %v2581_v44 = vpop.f32.mrb[147].mxu1 }
 0x5c8   :  { %v2582_v46 = vadd.f32 %v4228_v3, %v2581_v44 }
 0x5c9   :  { %v3078_v47 = vpack.c.bf16 %v2590_v43, %v2587_v61 }
 0x5ca   :  { %v3073_v48 = vpack.c.bf16 %v2582_v46, %v2579_v45 }
 0x5cb   :  { %3118 = vst [vmem:[%s4323_s13 + $0x48] sm:$0xff] %v3078_v47  }
 0x5cc   :  { %3117 = vst [vmem:[%s4323_s13 + $0x40] sm:$0xff] %v3073_v48  }
 0x5d4   :  { %v3299_v49 = vpop.f32.mrb[148].mxu1 }
 0x5d5   :  { %v2594_v50 = vpop.f32.mrb[149].mxu1  ;;  %v2603_v52 = vadd.f32 %v3299_v49, %v4228_v3 }
 0x5d6   :  { %v3300_v51 = vpop.f32.mrb[150].mxu1  ;;  %v2595_v55 = vadd.f32 %v4228_v3, %v2594_v50 }
 0x5d7   :  { %v2606_v53 = vadd.f32 %v3300_v51, %v4228_v3  ;;  %v2597_v54 = vpop.f32.mrb[151].mxu1 }
 0x5d8   :  { %v2598_v56 = vadd.f32 %v4228_v3, %v2597_v54 }
 0x5d9   :  { %v3088_v57 = vpack.c.bf16 %v2606_v53, %v2603_v52 }
 0x5da   :  { %v3083_v58 = vpack.c.bf16 %v2598_v56, %v2595_v55 }
 0x5db   :  { %3120 = vst [vmem:[%s4323_s13 + $0x58] sm:$0xff] %v3088_v57  }
 0x5dc   :  { %3119 = vst [vmem:[%s4323_s13 + $0x50] sm:$0xff] %v3083_v58  }
 0x5e4   :  { %v3303_v60 = vpop.f32.mrb[152].mxu1 }
 0x5e5   :  { %v2610_v62 = vpop.f32.mrb[153].mxu1  ;;  %v2619_v2 = vadd.f32 %v3303_v60, %v4228_v3 }
 0x5e6   :  { %v3304_v63 = vpop.f32.mrb[154].mxu1  ;;  %v2611_v6 = vadd.f32 %v4228_v3, %v2610_v62 }
 0x5e7   :  { %v2622_v4 = vadd.f32 %v3304_v63, %v4228_v3  ;;  %v2613_v5 = vpop.f32.mrb[155].mxu1 }
 0x5e8   :  { %v2614_v7 = vadd.f32 %v4228_v3, %v2613_v5 }
 0x5e9   :  { %v3098_v8 = vpack.c.bf16 %v2622_v4, %v2619_v2 }
 0x5ea   :  { %v3093_v9 = vpack.c.bf16 %v2614_v7, %v2611_v6 }
 0x5eb   :  { %3122 = vst [vmem:[%s4323_s13 + $0x68] sm:$0xff] %v3098_v8  }
 0x5ec   :  { %3121 = vst [vmem:[%s4323_s13 + $0x60] sm:$0xff] %v3093_v9  }
 0x5f4   :  { %v3307_v0 = vpop.f32.mrb[156].mxu1 }
 0x5f5   :  { %v2626_v10 = vpop.f32.mrb[157].mxu1  ;;  %v2635_v12 = vadd.f32 %v3307_v0, %v4228_v3 }
 0x5f6   :  { %v3308_v11 = vpop.f32.mrb[158].mxu1  ;;  %v2627_v15 = vadd.f32 %v4228_v3, %v2626_v10 }
 0x5f7   :  { %v2638_v13 = vadd.f32 %v3308_v11, %v4228_v3  ;;  %v2629_v14 = vpop.f32.mrb[159].mxu1 }
 0x5f8   :  { %v2630_v1 = vadd.f32 %v4228_v3, %v2629_v14 }
 0x5f9   :  { %v3108_v18 = vpack.c.bf16 %v2638_v13, %v2635_v12 }
 0x5fa   :  { %v3103_v16 = vpack.c.bf16 %v2630_v1, %v2627_v15 }
 0x5fb   :  { %3124 = vst [vmem:[%s4323_s13 + $0x78] sm:$0xff] %v3108_v18  }
 0x5fc   :  { %3123 = vst [vmem:[%s4323_s13 + $0x70] sm:$0xff] %v3103_v16  }
 0x5fd   :  { %2805 = vsyncpa [#allocation3], 1 }
 0x5fe   :  { %2806 = vsyncpa [#allocation5], 1 }
 0x5ff   :  { %2807 = vsyncpa [#allocation8], 1 }

</bundles_post_ra>
